<compile_context>
chip_gen: v6e
topology: v6e:2x2x1
jax: 0.10.0
libtpu: 0.0.40
codegen_flags: <defaults>
</compile_context>

<pallas_src>
import numpy as np
import jax
import jax.numpy as jnp
from jax.experimental import pallas as pl
from jax.experimental.pallas import tpu as pltpu

EPS = 1e-5
LANE = 128


# ----------------------------- Pallas kernel --------------------------------
def bottleneck_kernel(x_ref, top_ref, bot_ref,
                      w1_ref, b1_ref,
                      w2_ref, b2_ref,
                      w3_ref, b3_ref,
                      out_ref):
    _, TH, W, C = x_ref.shape          # (1, TH, W, Cpad)
    Cm = w1_ref.shape[1]               # padded mid channels
    i = pl.program_id(1)
    last = pl.num_programs(1) - 1

    # ---- conv1 (1x1, BN1 scale folded into w1) + bias + relu ---------------
    # Main tile rows: one bf16 MXU matmul, M = TH*W.
    xt = x_ref[...].reshape(TH * W, C).astype(jnp.bfloat16)
    h_t = jnp.maximum(
        jnp.dot(xt, w1_ref[...], preferred_element_type=jnp.float32)
        + b1_ref[...], 0.0)                                     # (TH*W, Cm) f32

    # Halo rows: tiny 2*W-row matmul.  Out-of-image halos must be exact zeros
    # for conv2's zero padding (NOT bn1(conv1(0))) -> gate with program id.
    xh = jnp.concatenate([top_ref[...].reshape(W, C),
                          bot_ref[...].reshape(W, C)],
                         axis=0).astype(jnp.bfloat16)           # (2W, C)
    h_h = jnp.maximum(
        jnp.dot(xh, w1_ref[...], preferred_element_type=jnp.float32)
        + b1_ref[...], 0.0).reshape(2, W, Cm)
    h_top = (h_h[0:1] * (i > 0).astype(jnp.float32)).astype(jnp.bfloat16)
    h_bot = (h_h[1:2] * (i < last).astype(jnp.float32)).astype(jnp.bfloat16)

    # rows 0 / TH+1 are the halo rows
    h3d = jnp.concatenate(
        [h_top, h_t.astype(jnp.bfloat16).reshape(TH, W, Cm), h_bot],
        axis=0)                                                 # (TH+2, W, Cm)

    # ---- conv2 (3x3, pad=1, BN2 scale folded into w2) ----------------------
    # Fuse the 3 dx taps into the contraction: lane-concat [x-1 | x | x+1]
    # -> per dy one MXU matmul with K = 3*Cm, accumulated in f32.
    zcol = jnp.zeros((TH + 2, 1, Cm), jnp.bfloat16)
    h_xm1 = jnp.concatenate([zcol, h3d[:, :W - 1, :]], axis=1)  # value at x-1
    h_xp1 = jnp.concatenate([h3d[:, 1:, :], zcol], axis=1)      # value at x+1
    hcat = jnp.concatenate([h_xm1, h3d, h_xp1], axis=2)         # (TH+2, W, 3Cm)

    acc = None
    for dy in range(3):
        lhs = hcat[dy:dy + TH].reshape(TH * W, 3 * Cm)
        d = jnp.dot(lhs, w2_ref[dy], preferred_element_type=jnp.float32)
        acc = d if acc is None else acc + d
    h2 = jnp.maximum(acc + b2_ref[...], 0.0)                    # (TH*W, Cm) f32

    # ---- conv3 (1x1, BN3 scale folded into w3) + bias ----------------------
    h3 = jnp.dot(h2.astype(jnp.bfloat16), w3_ref[...],
                 preferred_element_type=jnp.float32) + b3_ref[...]

    # ---- residual add (identity shortcut, x read late) + relu --------------
    out = jnp.maximum(h3 + x_ref[...].reshape(TH * W, C), 0.0)
    out_ref[...] = out.reshape(1, TH, W, C).astype(out_ref.dtype)


# ------------------------------ Wrapper --------------------------------------
def _round_up(x, m):
    return (x + m - 1) // m * m


def _pick_tile(h, desired):
    t = min(desired, h)
    while h % t:
        t -= 1
    return t


def _bn_fold(gamma, beta, mean, var, eps=EPS):
    scale = gamma / jnp.sqrt(var + eps)
    bias = beta - mean * scale
    return scale, bias


def bottleneck_forward(x_nhwc, p, *, row_tile=16):
    N, H, W, Cp = x_nhwc.shape
    Cin = p["w1"].shape[0]                 # conv1 output channels (= in_planes)
    Cpad = _round_up(Cp, LANE)             # lane-dense residual / output channels
    Cmid = _round_up(Cin, LANE)            # lane-dense mid channels
    th = _pick_tile(H, row_tile)
    n_ht = H // th

    # ---- fold BN (eval mode) into scales/biases, then scales into weights ----
    s1, b1 = _bn_fold(p["gamma1"], p["beta1"], p["mean1"], p["var1"])
    s2, b2 = _bn_fold(p["gamma2"], p["beta2"], p["mean2"], p["var2"])
    s3, b3 = _bn_fold(p["gamma3"], p["beta3"], p["mean3"], p["var3"])

    # torch (O, I, kH, kW) -> NHWC matmul layout, scale-folded (f32), padded, bf16
    w1 = jnp.transpose(p["w1"][:, :, 0, 0], (1, 0)) * s1[None, :]        # (Cp, Cin)
    w1 = jnp.pad(w1, ((0, Cpad - Cp), (0, Cmid - Cin))).astype(jnp.bfloat16)
    b1p = jnp.pad(b1, (0, Cmid - Cin)).reshape(1, -1).astype(jnp.float32)

    w2 = jnp.transpose(p["w2"], (2, 3, 1, 0)) * s2[None, None, None, :]  # (3,3,Ci,Co)
    w2 = jnp.pad(w2, ((0, 0), (0, 0), (0, Cmid - Cin), (0, Cmid - Cin)))
    w2 = w2.reshape(3, 3 * Cmid, Cmid).astype(jnp.bfloat16)   # dx fused into K
    b2p = jnp.pad(b2, (0, Cmid - Cin)).reshape(1, -1).astype(jnp.float32)

    w3 = jnp.transpose(p["w3"][:, :, 0, 0], (1, 0)) * s3[None, :]        # (Cin, Cp)
    w3 = jnp.pad(w3, ((0, Cmid - Cin), (0, Cpad - Cp))).astype(jnp.bfloat16)
    b3p = jnp.pad(b3, (0, Cpad - Cp)).reshape(1, -1).astype(jnp.float32)

    # ---- activations: pad channels to the lane width -------------------------
    x_p = jnp.pad(x_nhwc, ((0, 0), (0, 0), (0, 0), (0, Cpad - Cp)))

    grid = (N, n_ht)
    out = pl.pallas_call(
        bottleneck_kernel,
        out_shape=jax.ShapeDtypeStruct((N, H, W, Cpad), x_nhwc.dtype),
        grid_spec=pltpu.PrefetchScalarGridSpec(
            num_scalar_prefetch=0,
            grid=grid,
            in_specs=[
                # x tile
                pl.BlockSpec((1, th, W, Cpad), lambda n, i: (n, i, 0, 0)),
                # halo row above the tile (clamped; zeroed in-kernel at i == 0)
                pl.BlockSpec((1, 1, W, Cpad),
                             lambda n, i: (n, jnp.maximum(i * th - 1, 0), 0, 0)),
                # halo row below the tile (clamped; zeroed in-kernel at i == last)
                pl.BlockSpec((1, 1, W, Cpad),
                             lambda n, i: (n, jnp.minimum((i + 1) * th, H - 1), 0, 0)),
                # weights / biases: constant index maps -> VMEM resident
                pl.BlockSpec((Cpad, Cmid), lambda n, i: (0, 0)),             # w1
                pl.BlockSpec((1, Cmid), lambda n, i: (0, 0)),                # b1
                pl.BlockSpec((3, 3 * Cmid, Cmid), lambda n, i: (0, 0, 0)),   # w2
                pl.BlockSpec((1, Cmid), lambda n, i: (0, 0)),                # b2
                pl.BlockSpec((Cmid, Cpad), lambda n, i: (0, 0)),             # w3
                pl.BlockSpec((1, Cpad), lambda n, i: (0, 0)),                # b3
            ],
            out_specs=pl.BlockSpec((1, th, W, Cpad), lambda n, i: (n, i, 0, 0)),
        ),
        compiler_params=pltpu.CompilerParams(
            dimension_semantics=("parallel", "parallel"),
            vmem_limit_bytes=48 * 1024 * 1024),   # leaves headroom on v7x (64 MiB/TC)
    )(x_p, x_p, x_p, w1, b1p, w2, b2p, w3, b3p)

    return out[..., :Cp]          # drop the padded (all-zero) lanes


# ------------------------- deterministic parameters --------------------------
def init_params(key, in_planes, planes):
    ks = jax.random.split(key, 12)
    p = {}
    p["w1"] = 0.1 * jax.random.normal(ks[0], (in_planes, planes, 1, 1), jnp.float32)
    p["w2"] = 0.1 * jax.random.normal(ks[1], (in_planes, in_planes, 3, 3), jnp.float32)
    p["w3"] = 0.1 * jax.random.normal(ks[2], (planes, in_planes, 1, 1), jnp.float32)
    chans = {1: in_planes, 2: in_planes, 3: planes}
    k = 3
    for i in (1, 2, 3):
        c = chans[i]
        p[f"gamma{i}"] = jax.random.uniform(ks[k], (c,), jnp.float32, 0.5, 1.5); k += 1
        p[f"beta{i}"] = 0.1 * jax.random.normal(ks[k], (c,), jnp.float32); k += 1
        p[f"mean{i}"] = 0.1 * jax.random.normal(ks[k], (c,), jnp.float32); k += 1
        p[f"var{i}"] = jax.random.uniform(jax.random.fold_in(ks[k - 1], 7), (c,),
                                          jnp.float32, 0.5, 1.5)
    return p


# --------------------------- plain-JAX reference -----------------------------
def reference_nhwc(x, p):
    def conv(h, w, pad):
        return jax.lax.conv_general_dilated(
            h, w, (1, 1), pad, dimension_numbers=("NHWC", "OIHW", "NHWC"))

    def bn(h, i):
        return ((h - p[f"mean{i}"]) / jnp.sqrt(p[f"var{i}"] + EPS)
                * p[f"gamma{i}"] + p[f"beta{i}"])

    h = jax.nn.relu(bn(conv(x, p["w1"], "VALID"), 1))
    h = jax.nn.relu(bn(conv(h, p["w2"], "SAME"), 2))
    h = bn(conv(h, p["w3"], "VALID"), 3)
    return jax.nn.relu(h + x)


# ---------------------------------- main --------------------------------------
if __name__ == "__main__":
    # module semantics: conv1 expects `planes` input channels, conv3 produces
    # `planes`, so x has `planes` channels and the shortcut is identity.
    in_planes, planes = 8, 4
    N, H, W = 2, 16, 16

    key = jax.random.PRNGKey(0)
    kx, kp = jax.random.split(key)
    x_nchw = jax.random.normal(kx, (N, planes, H, W), jnp.float32)   # PyTorch NCHW
    params = init_params(kp, in_planes, planes)

    x_nhwc = jnp.transpose(x_nchw, (0, 2, 3, 1))                     # -> NHWC
    out_nhwc = bottleneck_forward(x_nhwc, params, row_tile=16)
    out_nchw = jnp.transpose(out_nhwc, (0, 3, 1, 2))                 # back to NCHW
    jax.block_until_ready(out_nchw)

    ref = reference_nhwc(x_nhwc, params)
    # bf16 MXU matmuls (f32 accumulate, BN scales folded into bf16 weights) vs
    # f32 reference -> loosened tolerance.
    np.testing.assert_allclose(np.asarray(out_nhwc), np.asarray(ref),
                               rtol=3e-2, atol=3e-2)
    # TODO(synk): training-mode BatchNorm (batch statistics + running-stat
    # update) is not implemented; BN uses folded running stats (eval mode).
    print("KERNEL_OK")
</pallas_src>

<mosaic_0001>
module attributes {stable_mosaic.version = 11 : i64} {
  func.func @bottleneck_kernel(%arg0: i32, %arg1: i32, %arg2: memref<1x16x16x128xf32, #tpu.memory_space<vmem>>, %arg3: memref<1x1x16x128xf32, #tpu.memory_space<vmem>>, %arg4: memref<1x1x16x128xf32, #tpu.memory_space<vmem>>, %arg5: memref<128x128xbf16, #tpu.memory_space<vmem>>, %arg6: memref<1x128xf32, #tpu.memory_space<vmem>>, %arg7: memref<3x384x128xbf16, #tpu.memory_space<vmem>>, %arg8: memref<1x128xf32, #tpu.memory_space<vmem>>, %arg9: memref<128x128xbf16, #tpu.memory_space<vmem>>, %arg10: memref<1x128xf32, #tpu.memory_space<vmem>>, %arg11: memref<1x16x16x128xf32, #tpu.memory_space<vmem>>) attributes {dimension_semantics = [#tpu.dimension_semantics<parallel>, #tpu.dimension_semantics<parallel>], iteration_bounds = array<i64: 2, 1>, scalar_prefetch = 0 : i64, scratch_operands = 0 : i64, tpu.core_type = #tpu.core_type<tc>, window_params = [{transform_indices = @transform_0, window_bounds = array<i64: 1, 16, 16, 128>}, {transform_indices = @transform_1, window_bounds = array<i64: 1, 1, 16, 128>}, {transform_indices = @transform_2, window_bounds = array<i64: 1, 1, 16, 128>}, {pipeline_mode = #tpu.pipeline_mode<synchronous>, transform_indices = @transform_3, window_bounds = array<i64: 128, 128>}, {pipeline_mode = #tpu.pipeline_mode<synchronous>, transform_indices = @transform_4, window_bounds = array<i64: 1, 128>}, {pipeline_mode = #tpu.pipeline_mode<synchronous>, transform_indices = @transform_5, window_bounds = array<i64: 3, 384, 128>}, {pipeline_mode = #tpu.pipeline_mode<synchronous>, transform_indices = @transform_6, window_bounds = array<i64: 1, 128>}, {pipeline_mode = #tpu.pipeline_mode<synchronous>, transform_indices = @transform_7, window_bounds = array<i64: 128, 128>}, {pipeline_mode = #tpu.pipeline_mode<synchronous>, transform_indices = @transform_8, window_bounds = array<i64: 1, 128>}, {transform_indices = @transform_9, window_bounds = array<i64: 1, 16, 16, 128>}]} {
    %c0 = arith.constant 0 : index
    %c0_0 = arith.constant 0 : index
    %c0_1 = arith.constant 0 : index
    %c0_2 = arith.constant 0 : index
    %0 = vector.load %arg2[%c0, %c0_0, %c0_1, %c0_2] : memref<1x16x16x128xf32, #tpu.memory_space<vmem>>, vector<1x16x16x128xf32>
    %1 = vector.shape_cast %0 : vector<1x16x16x128xf32> to vector<256x128xf32>
    %2 = arith.truncf %1 : vector<256x128xf32> to vector<256x128xbf16>
    %c0_3 = arith.constant 0 : index
    %c0_4 = arith.constant 0 : index
    %3 = vector.load %arg5[%c0_3, %c0_4] : memref<128x128xbf16, #tpu.memory_space<vmem>>, vector<128x128xbf16>
    %cst = arith.constant dense<0.000000e+00> : vector<256x128xf32>
    %4 = tpu.matmul %2, %3, %cst {dimension_numbers = #tpu.dot_dimension_numbers<[1], [0], [0], [1], [0, 0, 1, 1], [], []>} : vector<256x128xbf16>, vector<128x128xbf16>, vector<256x128xf32> -> vector<256x128xf32>
    %c0_5 = arith.constant 0 : index
    %c0_6 = arith.constant 0 : index
    %5 = vector.load %arg6[%c0_5, %c0_6] : memref<1x128xf32, #tpu.memory_space<vmem>>, vector<1x128xf32>
    %6 = vector.broadcast %5 : vector<1x128xf32> to vector<256x128xf32>
    %7 = arith.addf %4, %6 : vector<256x128xf32>
    %cst_7 = arith.constant 0.000000e+00 : f32
    %8 = vector.broadcast %cst_7 : f32 to vector<256x128xf32>
    %9 = arith.maximumf %7, %8 : vector<256x128xf32>
    %c0_8 = arith.constant 0 : index
    %c0_9 = arith.constant 0 : index
    %c0_10 = arith.constant 0 : index
    %c0_11 = arith.constant 0 : index
    %10 = vector.load %arg3[%c0_8, %c0_9, %c0_10, %c0_11] : memref<1x1x16x128xf32, #tpu.memory_space<vmem>>, vector<1x1x16x128xf32>
    %11 = vector.shape_cast %10 : vector<1x1x16x128xf32> to vector<16x128xf32>
    %c0_12 = arith.constant 0 : index
    %c0_13 = arith.constant 0 : index
    %c0_14 = arith.constant 0 : index
    %c0_15 = arith.constant 0 : index
    %12 = vector.load %arg4[%c0_12, %c0_13, %c0_14, %c0_15] : memref<1x1x16x128xf32, #tpu.memory_space<vmem>>, vector<1x1x16x128xf32>
    %13 = vector.shape_cast %12 : vector<1x1x16x128xf32> to vector<16x128xf32>
    %14 = tpu.concatenate %11, %13 in 0 : vector<16x128xf32>, vector<16x128xf32> -> vector<32x128xf32>
    %15 = arith.truncf %14 : vector<32x128xf32> to vector<32x128xbf16>
    %c0_16 = arith.constant 0 : index
    %c0_17 = arith.constant 0 : index
    %16 = vector.load %arg5[%c0_16, %c0_17] : memref<128x128xbf16, #tpu.memory_space<vmem>>, vector<128x128xbf16>
    %cst_18 = arith.constant dense<0.000000e+00> : vector<32x128xf32>
    %17 = tpu.matmul %15, %16, %cst_18 {dimension_numbers = #tpu.dot_dimension_numbers<[1], [0], [0], [1], [0, 0, 1, 1], [], []>} : vector<32x128xbf16>, vector<128x128xbf16>, vector<32x128xf32> -> vector<32x128xf32>
    %c0_19 = arith.constant 0 : index
    %c0_20 = arith.constant 0 : index
    %18 = vector.load %arg6[%c0_19, %c0_20] : memref<1x128xf32, #tpu.memory_space<vmem>>, vector<1x128xf32>
    %19 = vector.broadcast %18 : vector<1x128xf32> to vector<32x128xf32>
    %20 = arith.addf %17, %19 : vector<32x128xf32>
    %cst_21 = arith.constant 0.000000e+00 : f32
    %21 = vector.broadcast %cst_21 : f32 to vector<32x128xf32>
    %22 = arith.maximumf %20, %21 : vector<32x128xf32>
    %23 = vector.shape_cast %22 : vector<32x128xf32> to vector<2x16x128xf32>
    %24 = vector.extract_strided_slice %23 {offsets = [0, 0, 0], sizes = [1, 16, 128], strides = [1, 1, 1]} : vector<2x16x128xf32> to vector<1x16x128xf32>
    %c0_i32 = arith.constant 0 : i32
    %25 = arith.cmpi sgt, %arg1, %c0_i32 : i32
    %26 = arith.extui %25 : i1 to i32
    %27 = arith.sitofp %26 : i32 to f32
    %28 = vector.broadcast %27 : f32 to vector<1x16x128xf32>
    %29 = arith.mulf %24, %28 : vector<1x16x128xf32>
    %30 = arith.truncf %29 : vector<1x16x128xf32> to vector<1x16x128xbf16>
    %31 = vector.extract_strided_slice %23 {offsets = [1, 0, 0], sizes = [1, 16, 128], strides = [1, 1, 1]} : vector<2x16x128xf32> to vector<1x16x128xf32>
    %c0_i32_22 = arith.constant 0 : i32
    %32 = arith.cmpi slt, %arg1, %c0_i32_22 : i32
    %33 = arith.extui %32 : i1 to i32
    %34 = arith.sitofp %33 : i32 to f32
    %35 = vector.broadcast %34 : f32 to vector<1x16x128xf32>
    %36 = arith.mulf %31, %35 : vector<1x16x128xf32>
    %37 = arith.truncf %36 : vector<1x16x128xf32> to vector<1x16x128xbf16>
    %38 = arith.truncf %9 : vector<256x128xf32> to vector<256x128xbf16>
    %39 = vector.shape_cast %38 : vector<256x128xbf16> to vector<16x16x128xbf16>
    %40 = tpu.concatenate %30, %39, %37 in 0 : vector<1x16x128xbf16>, vector<16x16x128xbf16>, vector<1x16x128xbf16> -> vector<18x16x128xbf16>
    %cst_23 = arith.constant 0.000000e+00 : bf16
    %41 = vector.broadcast %cst_23 : bf16 to vector<18x1x128xbf16>
    %42 = vector.extract_strided_slice %40 {offsets = [0, 0, 0], sizes = [18, 15, 128], strides = [1, 1, 1]} : vector<18x16x128xbf16> to vector<18x15x128xbf16>
    %43 = tpu.concatenate %41, %42 in 1 : vector<18x1x128xbf16>, vector<18x15x128xbf16> -> vector<18x16x128xbf16>
    %44 = vector.extract_strided_slice %40 {offsets = [0, 1, 0], sizes = [18, 15, 128], strides = [1, 1, 1]} : vector<18x16x128xbf16> to vector<18x15x128xbf16>
    %45 = tpu.concatenate %44, %41 in 1 : vector<18x15x128xbf16>, vector<18x1x128xbf16> -> vector<18x16x128xbf16>
    %46 = tpu.concatenate %43, %40, %45 in 2 : vector<18x16x128xbf16>, vector<18x16x128xbf16>, vector<18x16x128xbf16> -> vector<18x16x384xbf16>
    %47 = vector.extract_strided_slice %46 {offsets = [0, 0, 0], sizes = [16, 16, 384], strides = [1, 1, 1]} : vector<18x16x384xbf16> to vector<16x16x384xbf16>
    %48 = vector.shape_cast %47 : vector<16x16x384xbf16> to vector<256x384xbf16>
    %c0_24 = arith.constant 0 : index
    %c0_25 = arith.constant 0 : index
    %c0_26 = arith.constant 0 : index
    %49 = vector.load %arg7[%c0_24, %c0_25, %c0_26] : memref<3x384x128xbf16, #tpu.memory_space<vmem>>, vector<1x384x128xbf16>
    %50 = vector.shape_cast %49 : vector<1x384x128xbf16> to vector<384x128xbf16>
    %cst_27 = arith.constant dense<0.000000e+00> : vector<256x128xf32>
    %51 = tpu.matmul %48, %50, %cst_27 {dimension_numbers = #tpu.dot_dimension_numbers<[1], [0], [0], [1], [0, 0, 1, 1], [], []>} : vector<256x384xbf16>, vector<384x128xbf16>, vector<256x128xf32> -> vector<256x128xf32>
    %52 = vector.extract_strided_slice %46 {offsets = [1, 0, 0], sizes = [16, 16, 384], strides = [1, 1, 1]} : vector<18x16x384xbf16> to vector<16x16x384xbf16>
    %53 = vector.shape_cast %52 : vector<16x16x384xbf16> to vector<256x384xbf16>
    %c1 = arith.constant 1 : index
    %c0_28 = arith.constant 0 : index
    %c0_29 = arith.constant 0 : index
    %54 = vector.load %arg7[%c1, %c0_28, %c0_29] : memref<3x384x128xbf16, #tpu.memory_space<vmem>>, vector<1x384x128xbf16>
    %55 = vector.shape_cast %54 : vector<1x384x128xbf16> to vector<384x128xbf16>
    %cst_30 = arith.constant dense<0.000000e+00> : vector<256x128xf32>
    %56 = tpu.matmul %53, %55, %cst_30 {dimension_numbers = #tpu.dot_dimension_numbers<[1], [0], [0], [1], [0, 0, 1, 1], [], []>} : vector<256x384xbf16>, vector<384x128xbf16>, vector<256x128xf32> -> vector<256x128xf32>
    %57 = arith.addf %51, %56 : vector<256x128xf32>
    %58 = vector.extract_strided_slice %46 {offsets = [2, 0, 0], sizes = [16, 16, 384], strides = [1, 1, 1]} : vector<18x16x384xbf16> to vector<16x16x384xbf16>
    %59 = vector.shape_cast %58 : vector<16x16x384xbf16> to vector<256x384xbf16>
    %c2 = arith.constant 2 : index
    %c0_31 = arith.constant 0 : index
    %c0_32 = arith.constant 0 : index
    %60 = vector.load %arg7[%c2, %c0_31, %c0_32] : memref<3x384x128xbf16, #tpu.memory_space<vmem>>, vector<1x384x128xbf16>
    %61 = vector.shape_cast %60 : vector<1x384x128xbf16> to vector<384x128xbf16>
    %cst_33 = arith.constant dense<0.000000e+00> : vector<256x128xf32>
    %62 = tpu.matmul %59, %61, %cst_33 {dimension_numbers = #tpu.dot_dimension_numbers<[1], [0], [0], [1], [0, 0, 1, 1], [], []>} : vector<256x384xbf16>, vector<384x128xbf16>, vector<256x128xf32> -> vector<256x128xf32>
    %63 = arith.addf %57, %62 : vector<256x128xf32>
    %c0_34 = arith.constant 0 : index
    %c0_35 = arith.constant 0 : index
    %64 = vector.load %arg8[%c0_34, %c0_35] : memref<1x128xf32, #tpu.memory_space<vmem>>, vector<1x128xf32>
    %65 = vector.broadcast %64 : vector<1x128xf32> to vector<256x128xf32>
    %66 = arith.addf %63, %65 : vector<256x128xf32>
    %cst_36 = arith.constant 0.000000e+00 : f32
    %67 = vector.broadcast %cst_36 : f32 to vector<256x128xf32>
    %68 = arith.maximumf %66, %67 : vector<256x128xf32>
    %69 = arith.truncf %68 : vector<256x128xf32> to vector<256x128xbf16>
    %c0_37 = arith.constant 0 : index
    %c0_38 = arith.constant 0 : index
    %70 = vector.load %arg9[%c0_37, %c0_38] : memref<128x128xbf16, #tpu.memory_space<vmem>>, vector<128x128xbf16>
    %cst_39 = arith.constant dense<0.000000e+00> : vector<256x128xf32>
    %71 = tpu.matmul %69, %70, %cst_39 {dimension_numbers = #tpu.dot_dimension_numbers<[1], [0], [0], [1], [0, 0, 1, 1], [], []>} : vector<256x128xbf16>, vector<128x128xbf16>, vector<256x128xf32> -> vector<256x128xf32>
    %c0_40 = arith.constant 0 : index
    %c0_41 = arith.constant 0 : index
    %72 = vector.load %arg10[%c0_40, %c0_41] : memref<1x128xf32, #tpu.memory_space<vmem>>, vector<1x128xf32>
    %73 = vector.broadcast %72 : vector<1x128xf32> to vector<256x128xf32>
    %74 = arith.addf %71, %73 : vector<256x128xf32>
    %c0_42 = arith.constant 0 : index
    %c0_43 = arith.constant 0 : index
    %c0_44 = arith.constant 0 : index
    %c0_45 = arith.constant 0 : index
    %75 = vector.load %arg2[%c0_42, %c0_43, %c0_44, %c0_45] : memref<1x16x16x128xf32, #tpu.memory_space<vmem>>, vector<1x16x16x128xf32>
    %76 = vector.shape_cast %75 : vector<1x16x16x128xf32> to vector<256x128xf32>
    %77 = arith.addf %74, %76 : vector<256x128xf32>
    %cst_46 = arith.constant 0.000000e+00 : f32
    %78 = vector.broadcast %cst_46 : f32 to vector<256x128xf32>
    %79 = arith.maximumf %77, %78 : vector<256x128xf32>
    %80 = vector.shape_cast %79 : vector<256x128xf32> to vector<1x16x16x128xf32>
    %c0_47 = arith.constant 0 : index
    %c0_48 = arith.constant 0 : index
    %c0_49 = arith.constant 0 : index
    %c0_50 = arith.constant 0 : index
    %81 = vector.load %arg11[%c0_47, %c0_48, %c0_49, %c0_50] : memref<1x16x16x128xf32, #tpu.memory_space<vmem>>, vector<1x16x16x128xf32>
    tpu.vector_store %arg11[%c0_47, %c0_48, %c0_49, %c0_50], %80 {strides = array<i32>} : memref<1x16x16x128xf32, #tpu.memory_space<vmem>>, vector<1x16x16x128xf32>,
    return
  }
  func.func @transform_0(%arg0: i32, %arg1: i32) -> (i32, i32, i32, i32) {
    %c0_i32 = arith.constant 0 : i32
    %c0_i32_0 = arith.constant 0 : i32
    %c0_i32_1 = arith.constant 0 : i32
    return %arg0, %arg1, %c0_i32, %c0_i32_0 : i32, i32, i32, i32
  }
  func.func @transform_1(%arg0: i32, %arg1: i32) -> (i32, i32, i32, i32) {
    %c16_i32 = arith.constant 16 : i32
    %0 = arith.muli %arg1, %c16_i32 : i32
    %c1_i32 = arith.constant 1 : i32
    %1 = arith.subi %0, %c1_i32 : i32
    %c0_i32 = arith.constant 0 : i32
    %2 = arith.maxsi %1, %c0_i32 : i32
    %c0_i32_0 = arith.constant 0 : i32
    %c0_i32_1 = arith.constant 0 : i32
    %c0_i32_2 = arith.constant 0 : i32
    return %arg0, %2, %c0_i32_0, %c0_i32_1 : i32, i32, i32, i32
  }
  func.func @transform_2(%arg0: i32, %arg1: i32) -> (i32, i32, i32, i32) {
    %c1_i32 = arith.constant 1 : i32
    %0 = arith.addi %arg1, %c1_i32 : i32
    %c16_i32 = arith.constant 16 : i32
    %1 = arith.muli %0, %c16_i32 : i32
    %c15_i32 = arith.constant 15 : i32
    %2 = arith.minsi %1, %c15_i32 : i32
    %c0_i32 = arith.constant 0 : i32
    %c0_i32_0 = arith.constant 0 : i32
    %c0_i32_1 = arith.constant 0 : i32
    return %arg0, %2, %c0_i32, %c0_i32_0 : i32, i32, i32, i32
  }
  func.func @transform_3(%arg0: i32, %arg1: i32) -> (i32, i32) {
    %c0_i32 = arith.constant 0 : i32
    %c0_i32_0 = arith.constant 0 : i32
    %c0_i32_1 = arith.constant 0 : i32
    return %c0_i32, %c0_i32_0 : i32, i32
  }
  func.func @transform_4(%arg0: i32, %arg1: i32) -> (i32, i32) {
    %c0_i32 = arith.constant 0 : i32
    %c0_i32_0 = arith.constant 0 : i32
    %c0_i32_1 = arith.constant 0 : i32
    return %c0_i32, %c0_i32_0 : i32, i32
  }
  func.func @transform_5(%arg0: i32, %arg1: i32) -> (i32, i32, i32) {
    %c0_i32 = arith.constant 0 : i32
    %c0_i32_0 = arith.constant 0 : i32
    %c0_i32_1 = arith.constant 0 : i32
    %c0_i32_2 = arith.constant 0 : i32
    return %c0_i32, %c0_i32_0, %c0_i32_1 : i32, i32, i32
  }
  func.func @transform_6(%arg0: i32, %arg1: i32) -> (i32, i32) {
    %c0_i32 = arith.constant 0 : i32
    %c0_i32_0 = arith.constant 0 : i32
    %c0_i32_1 = arith.constant 0 : i32
    return %c0_i32, %c0_i32_0 : i32, i32
  }
  func.func @transform_7(%arg0: i32, %arg1: i32) -> (i32, i32) {
    %c0_i32 = arith.constant 0 : i32
    %c0_i32_0 = arith.constant 0 : i32
    %c0_i32_1 = arith.constant 0 : i32
    return %c0_i32, %c0_i32_0 : i32, i32
  }
  func.func @transform_8(%arg0: i32, %arg1: i32) -> (i32, i32) {
    %c0_i32 = arith.constant 0 : i32
    %c0_i32_0 = arith.constant 0 : i32
    %c0_i32_1 = arith.constant 0 : i32
    return %c0_i32, %c0_i32_0 : i32, i32
  }
  func.func @transform_9(%arg0: i32, %arg1: i32) -> (i32, i32, i32, i32) {
    %c0_i32 = arith.constant 0 : i32
    %c0_i32_0 = arith.constant 0 : i32
    %c0_i32_1 = arith.constant 0 : i32
    return %arg0, %arg1, %c0_i32, %c0_i32_0 : i32, i32, i32, i32
  }
}

</mosaic_0001>

<bundles_post_ra>
// kernel: tpu_custom_call.1
= control target key start
LH: loop header
LB: loop body
LE: loop exit
PB: predicated region body
PF: predicated region fallthrough
CT: control target
= control target key end

     0   :  { %s6097_s0 = inlined_call_operand.hbm [shape: f32[2,16,16,128], index: 0, kind: input, shape index: {}]   ;;  %s6098_s1 = inlined_call_operand.hbm [shape: f32[2,16,16,128], index: 1, kind: input, shape index: {}]   ;;  %s6099_s2 = inlined_call_operand.hbm [shape: f32[2,16,16,128], index: 2, kind: input, shape index: {}]   ;;  %s6100_s3 = inlined_call_operand.hbm [shape: bf16[128,128], index: 3, kind: input, shape index: {}]   ;;  %s6101_s4 = inlined_call_operand.vmem [shape: f32[1,128], index: 4, kind: input, shape index: {}]   ;;  %s6102_s5 = inlined_call_operand.hbm [shape: bf16[3,384,128], index: 5, kind: input, shape index: {}]   ;;  %s6103_s6 = inlined_call_operand.vmem [shape: f32[1,128], index: 6, kind: input, shape index: {}]   ;;  %s6104_s7 = inlined_call_operand.hbm [shape: bf16[128,128], index: 7, kind: input, shape index: {}]   ;;  %s6105_s8 = inlined_call_operand.vmem [shape: f32[1,128], index: 8, kind: input, shape index: {}]   ;;  %s6106_s9 = inlined_call_operand.hbm [shape: f32[2,16,16,128], index: 9, kind: output, shape index: {}]  }
   0x1   :  { %6138 = sst [smem:[#allocation32_spill]] %s6098_s1 }
   0x2   :  { %6139 = sst [smem:[#allocation33_spill]] %s6100_s3 }
   0x3   :  { %6140 = sst [smem:[#allocation34_spill]] %s6102_s5 }
   0x4   :  { %6141 = sst [smem:[#allocation35_spill]] %s6106_s9 }
   0x5   :  { %14 = vsyncpa [#allocation3], 0 }
   0x6   :  { %16 = vsyncpa [#allocation3 + $0x1], 0 }
   0x7   :  { %17 = vsyncpa [#allocation6], 0 }
   0x8   :  { %19 = vsyncpa [#allocation6 + $0x1], 0 }
   0x9   :  { %20 = vsyncpa [#allocation9], 0 }
   0xa   :  { %21 = vsyncpa [#allocation12], 0 }
   0xb   :  { %22 = vsyncpa [#allocation4], 0 }
   0xc   :  { %24 = vsyncpa [#allocation4 + $0x1], 0  ;;  %s4764_s30 = smov 0   ;;  %s4766_s10 = smov 0  }
   0xd   :  { %s4768_s11 = smov 0   ;;  %s4770_s12 = smov 0  }
   0xe   :  { %s4772_s13 = smov 0   ;;  %s4774_s14 = smov 0  }
   0xf LB: > { %6142 = sst [smem:[#allocation19_spill]] %s4679_s30  ;;  %s4795_s15 = sadd.s32 4294967295, %s4699_s14   ;;  %s4699_s14 = sphi %s4774_s14, %s30_s14   ;;  %s4695_s13 = sphi %s4772_s13, %s6214_s13   ;;  %s4691_s12 = sphi %s4770_s12, %s6210_s12   ;;  %s4687_s11 = sphi %s4768_s11, %s6209_s11   ;;  %s4683_s10 = sphi %s4766_s10, %s6213_s10   ;;  %s4679_s30 = sphi %s4764_s30, %s6212_s30  }
  0x10   : > { %6143 = sst [smem:[#allocation20_spill]] %s4687_s11  ;;  %s3349_s16 = sadd.s32 4294967294, %s4699_s14  }
  0x11   : > { %6144 = sst [smem:[#allocation21_spill]] %s4691_s12  ;;  %p58_p0 = scmp.ne.s32.totalorder %s4687_s11, %s4683_s10 }
  0x12   : > { %6145 = sst [smem:[#allocation22_spill]] %s4695_s13  ;;  %p59_p1 = scmp.eq.s32.totalorder %s4699_s14, 0 }
  0x13   : > { %p64_p2 = scmp.ne.s32.totalorder %s4683_s10, %s4679_s30  ;;  %p6107_p3 = scmp.eq.s32.totalorder %s4795_s15, 0 }
  0x14   : > { %p4804_p4 = por %p59_p1, %p58_p0  ;;  %p288_p5 = scmp.eq.s32.totalorder %s4795_s15, 1 }
  0x15   : > { %p4811_p6 = por %p6107_p3, %p64_p2  ;;  %p294_p7 = scmp.eq.s32.totalorder %s3349_s16, 1 }
  0x16   : > { %p4815_p8 = por %p288_p5, %p58_p0  ;;  %p3350_p9 = scmp.ge.s32.totalorder %s4699_s14, 1 }
  0x17   : > { %p4820_p10 = por %p294_p7, %p64_p2  ;;  %p301_p11 = scmp.lt.s32.totalorder %s4699_s14, 3 }
  0x18   : > { %s6148_s19 = scalar_select %p4815_p8, 1, 0 }
  0x19   : > { %s6150_s20 = scalar_select %p4820_p10, 1, 0 }
  0x1a   : > { %6149 = sst [smem:[#allocation23_spill]] %s6148_s19  ;;  %p4825_p12 = pnand %p3350_p9, %p301_p11 }
  0x1b   : > { %6151 = sst [smem:[#allocation24_spill]] %s6150_s20  ;;  %s4701_s22 = smov [#allocation8]  }
  0x1c   : > { %s313_s23 = sshll.u32 %s4701_s22, 4  ;;  %p4236_p13 = pneg %p4825_p12  ;;  %s314_s23 = int_to_ptr.vmem [resolvable:$true] %s313_s23 }
  0x1d   : > { %s42_s25 = sadd.s32 1, %s4695_s13  ;;  %s51_s26 = sadd.s32 1, %s4687_s11 }
  0x1e   : > { %p4834_p1 = pnand %p4236_p13, %p6107_p3  ;;  %p4840_p2 = scmp.ge.s32.totalorder %s42_s25, 2 }
  0x1f   : > { %s4456_s28 = scalar_lea.vmem %s314_s23, 1024  ;;  %p4464_p13 = scmp.lt.s32.totalorder %s314_s23, %s314_s23 }
  0x20   : > { %p4447_p5 = pneg %p4834_p1  ;;  %p4457_p7 = scmp.ne.s32.totalorder %s314_s23, %s4456_s28 }
  0x21   : > { %p4465_p0 = scmp.lt.s32.totalorder %s4456_s28, %s4456_s28 }
  0x22   : > { %p4459_p9 = pnand %p4457_p7, %p4447_p5 }
  0x23   : > { %p4466_p3 = por %p4465_p0, %p4464_p13 }
  0x24   : > { %p4460_p11 = pneg %p4459_p9 }
  0x26   : > { %p4467_p10 = pnand %p4466_p3, %p4460_p11 }
  0x28   : > { %4470 = shalt.err (!%p4467_p10)
}
  0x29   : > { %s6113_s29 = smov 64   ;;  %s6115_s16 = smov 4  }
  0x2a   : > { %s6155_s3 = sld [smem:[#allocation33_spill]]  ;;  %s6216_s25 = smov (%p4840_p2, %s42_s25), 0 }
  0x2b   : > { %6156 = sst [smem:[#allocation25_spill]] %s6216_s25  ;;  %p4263_p3 = scmp.lt.s32.totalorder %s4699_s14, 2 }
  0x2c   : > { %s4863_s20 = sand.u32 1, %s4687_s11   ;;  %s46_s30 = ssub.s32 %s4695_s13, %s6216_s25 }
  0x2d   : > { %s4868_s9 = sshll.u32 %s4695_s13, 12  ;;  %p49_p10 = scmp.eq.s32.totalorder %s46_s30, 0 }
  0x2e   : > { %p4872_p0 = pnand %p4263_p3, %p4804_p4  ;;  %s386_s27 = sand.u32 1, %s4699_s14  }
  0x2f   : > { %s3358_s22 = sshll.u32 %s4863_s20, 4  ;;  %s6159_s1 = sld [smem:[#allocation32_spill]] }
  0x30   : > { %4239 = dma.hbm_to_vmem [thread:$0]  (!%p4834_p1), %s6155_s3, 1024, %s314_s23, [#allocation9], %s6113_s29, %s6113_s29, %s6115_s16  }
  0x31   : > { %s4877_s23 = scalar_select %p49_p10, %s4687_s11, %s51_s26  }
  0x32   : > { %s390_s3 = scalar_lea.vmem [#allocation5], %s3358_s22  ;;  %s417_s13 = scalar_lea.vmem [#allocation7], %s3358_s22 }
  0x33   : > { %6158 = sst [smem:[#allocation26_spill]] %s4877_s23  ;;  %s403_s25 = sshll.u32 %s390_s3, 4  ;;  %s404_s25 = int_to_ptr.vmem [resolvable:$true] %s403_s25 }
  0x34   : > { %s430_s30 = sshll.u32 %s417_s13, 4  ;;  %s4885_s17 = scalar_lea.sflag [#allocation6], %s386_s27  ;;  %s4898_s30 = int_to_ptr.vmem [resolvable:$true] %s430_s30 }
  0x35   : > { %s402_s16 = scalar_lea.hbm %s6159_s1, %s4868_s9  ;;  %p6119_p4 = pneg %p4872_p0 }
  0x36   : > { %s4484_s12 = scalar_lea.vmem %s404_s25, 256  ;;  %s4704_s26 = smov [#allocation5]  }
  0x37   : > { %p4485_p2 = scmp.ne.s32.totalorder %s404_s25, %s4484_s12  ;;  %s4489_s23 = sshll.u32 %s4704_s26, 4  ;;  %s4490_s23 = int_to_ptr.vmem [resolvable:$false] %s4489_s23 }
  0x38   : > { %s4491_s29 = scalar_lea.vmem %s4490_s23, 512  ;;  %p4492_p11 = scmp.lt.s32.totalorder %s404_s25, %s4490_s23 }
  0x39   : > { %p4487_p7 = pnand %p4485_p2, %p6119_p4  ;;  %p4493_p13 = scmp.lt.s32.totalorder %s4491_s29, %s4484_s12 }
  0x3b   : > { %p4488_p9 = pneg %p4487_p7  ;;  %p4494_p3 = por %p4493_p13, %p4492_p11 }
  0x3d   : > { %p4495_p10 = pnand %p4494_p3, %p4488_p9 }
  0x3f   : > { %4498 = shalt.err (!%p4495_p10)
}
  0x40   : > { %s6120_s3 = smov 128   ;;  %s6122_s13 = smov 8  }
  0x41   : > { %4252 = dma.hbm_to_vmem [thread:$0]  (!%p4872_p0), %s402_s16, 256, %s404_s25, %s4885_s17, %s6120_s3, %s6120_s3, %s6122_s13  }
  0x42   : > { %s4707_s27 = smov [#allocation10]   ;;  %s4708_s23 = smov [#allocation11]  }
  0x43   : > { %s329_s22 = sshll.u32 %s4707_s27, 4  ;;  %s345_s12 = sshll.u32 %s4708_s23, 4  ;;  %s330_s22 = int_to_ptr.vmem [resolvable:$true] %s329_s22  ;;  %s346_s12 = int_to_ptr.vmem [resolvable:$true] %s345_s12 }
  0x44   : > { %s4510_s28 = scalar_lea.vmem %s330_s22, 9216  ;;  %p4518_p11 = scmp.lt.s32.totalorder %s330_s22, %s330_s22 }
  0x45   : > { %p4511_p2 = scmp.ne.s32.totalorder %s330_s22, %s4510_s28  ;;  %p4519_p13 = scmp.lt.s32.totalorder %s4510_s28, %s4510_s28 }
  0x47   : > { %p4513_p7 = pnand %p4511_p2, %p4447_p5  ;;  %p4520_p3 = por %p4519_p13, %p4518_p11 }
  0x49   : > { %p4514_p9 = pneg %p4513_p7 }
  0x4b   : > { %p4521_p10 = pnand %p4520_p3, %p4514_p9 }
  0x4d   : > { %4524 = shalt.err (!%p4521_p10)
}
  0x4e   : > { %s6160_s25 = smov 4   ;;  %s6161_s16 = smov 64  }
  0x4f   : > { %s6162_s5 = sld [smem:[#allocation34_spill]]  ;;  %s4536_s27 = scalar_lea.vmem %s346_s12, 1024 }
  0x50   : > { %p4537_p4 = scmp.ne.s32.totalorder %s346_s12, %s4536_s27  ;;  %p4544_p11 = scmp.lt.s32.totalorder %s346_s12, %s346_s12 }
  0x51   : > { %p4545_p9 = scmp.lt.s32.totalorder %s4536_s27, %s4536_s27 }
  0x52   : > { %p4539_p2 = pnand %p4537_p4, %p4447_p5 }
  0x53   : > { %p4546_p13 = por %p4545_p9, %p4544_p11 }
  0x54   : > { %p4540_p7 = pneg %p4539_p2 }
  0x55   : > { %4242 = dma.hbm_to_vmem [thread:$0]  (!%p4834_p1), %s6162_s5, 9216, %s330_s22, [#allocation9], %s6161_s16, %s6161_s16, %s6160_s25  }
  0x56   : > { %p4547_p3 = pnand %p4546_p13, %p4540_p7 }
  0x58   : > { %4550 = shalt.err (!%p4547_p3)
}
  0x59   : > { %4245 = dma.hbm_to_vmem [thread:$0]  (!%p4834_p1), %s6104_s7, 1024, %s346_s12, [#allocation12], %s6161_s16, %s6161_s16, %s6160_s25  }
  0x5a   : > { %s3355_s22 = sshll.u32 %s4863_s20, 8  ;;  %s375_s27 = scalar_lea.hbm %s6097_s0, %s4868_s9 }
  0x5b   : > { %s3471_s3 = sadd.s32 3840, %s4868_s9  ;;  %s366_s13 = scalar_lea.vmem [#allocation2], %s3355_s22 }
  0x5c   : > { %s376_s24 = sshll.u32 %s366_s13, 4  ;;  %s4931_s11 = scalar_lea.hbm %s6099_s2, %s3471_s3  ;;  %s377_s24 = int_to_ptr.vmem [resolvable:$true] %s376_s24 }
  0x5d   : > { %s363_s23 = scalar_lea.sflag [#allocation3], %s4863_s20  ;;  %s4564_s28 = scalar_lea.vmem %s377_s24, 4096 }
  0x5e   : > { %p4565_p5 = scmp.ne.s32.totalorder %s377_s24, %s4564_s28  ;;  %p6163_p4 = pneg %p4872_p0 }
  0x5f   : > { %s4709_s12 = smov [#allocation2]  }
  0x60   : > { %p4567_p1 = pnand %p4565_p5, %p6163_p4  ;;  %s4569_s25 = sshll.u32 %s4709_s12, 4  ;;  %s4570_s25 = int_to_ptr.vmem [resolvable:$false] %s4569_s25 }
  0x61   : > { %s4571_s16 = scalar_lea.vmem %s4570_s25, 8192  ;;  %p4572_p2 = scmp.lt.s32.totalorder %s377_s24, %s4570_s25 }
  0x62   : > { %p4568_p10 = pneg %p4567_p1  ;;  %p4573_p7 = scmp.lt.s32.totalorder %s4571_s16, %s4564_s28 }
  0x64   : > { %p4574_p11 = por %p4573_p7, %p4572_p2 }
  0x66   : > { %p4575_p9 = pnand %p4574_p11, %p4568_p10 }
  0x68   : > { %4578 = shalt.err (!%p4575_p9)
}
  0x69   : > { %s6164_s1 = smov 8   ;;  %s6165_s5 = smov 128  }
  0x6a   : > { %4249 = dma.hbm_to_vmem [thread:$0]  (!%p4872_p0), %s375_s27, 4096, %s377_s24, %s363_s23, %s6165_s5, %s6165_s5, %s6164_s1  }
  0x6b   : > { %s4592_s9 = scalar_lea.vmem %s4898_s30, 256  ;;  %p6166_p3 = pmov %p6163_p4 }
  0x6c   : > { %p4593_p13 = scmp.ne.s32.totalorder %s4898_s30, %s4592_s9  ;;  %s4710_s20 = smov [#allocation7]  }
  0x6d   : > { %s4597_s3 = sshll.u32 %s4710_s20, 4  ;;  %s4598_s3 = int_to_ptr.vmem [resolvable:$false] %s4597_s3 }
  0x6e   : > { %p4595_p5 = pnand %p4593_p13, %p6166_p3  ;;  %s4599_s13 = scalar_lea.vmem %s4598_s3, 512 }
  0x6f   : > { %p4600_p1 = scmp.lt.s32.totalorder %s4898_s30, %s4598_s3  ;;  %p4601_p10 = scmp.lt.s32.totalorder %s4599_s13, %s4592_s9 }
  0x70   : > { %p4596_p4 = pneg %p4595_p5 }
  0x71   : > { %p4602_p2 = por %p4601_p10, %p4600_p1 }
  0x73   : > { %p4603_p7 = pnand %p4602_p2, %p4596_p4 }
  0x75   : > { %4606 = shalt.err (!%p4603_p7)
}
  0x76   : > { %4255 = dma.hbm_to_vmem [thread:$0]  (!%p4872_p0), %s4931_s11, 256, %s4898_s30, %s4885_s17, %s6165_s5, %s6165_s5, %s6164_s1  }
  0x77   : > { %442 = sbr.rel (%p4825_p12) target bundleno = 1140 (0x474), region = 56 }
  0x7c   : > { %s4959_s22 = sand.u32 1, %s4683_s10  }
  0x7d   : > { %s3365_s26 = sshll.u32 %s4959_s22, 8  ;;  %s445_s29 = scalar_lea.sflag [#allocation3], %s4959_s22 }
  0x7e   : > { %s4965_s19 = scalar_lea.vmem [#allocation2], %s3365_s26 }
  0x7f   : > { %4658 = dma.done.wait (%p4811_p6), %s445_s29, 4096  }
  0x80   : > { %4660 = vsyncadd (%p4811_p6), %s445_s29, 4294963200  ;;  %s453_s11 = sand.u32 1, %s4795_s15   ;;  %s3366_s21 = sshll.u32 %s4959_s22, 4 }
  0x81   : > { %s454_s30 = scalar_lea.sflag [#allocation6], %s453_s11  ;;  %s4973_s17 = scalar_lea.vmem [#allocation5], %s3366_s21 }
  0x82   : > { %4662 = dma.done.wait (%p4811_p6), %s454_s30, 512  }
  0x83   : > { %4664 = vsyncadd (%p4811_p6), %s454_s30, 4294966784  ;;  %s4979_s27 = scalar_lea.vmem [#allocation7], %s3366_s21  ;;  %p6167_p12 = scmp.eq.s32.totalorder %s4795_s15, 0 }
  0x85   : > { %4666 = dma.done.wait (%p6167_p12), [#allocation9], 10240   ;;  %p6168_p0 = pmov %p6167_p12 }
  0x87   : > { %4668 = vsyncadd (%p6168_p0), [#allocation9], 4294957056  ;;  %p6169_p11 = pmov %p6168_p0 }
  0x88   : > { %p6170_p9 = pmov %p6168_p0 }
  0x89   : > { %4670 = dma.done.wait (%p6169_p11), [#allocation12], 1024  }
  0x8a   : > { %4672 = vsyncadd (%p6170_p9), [#allocation12], 4294966272  ;;  %v4325_v0 = vld [vmem:[#allocation8 + $0x38] sm:$0xff]   ;;  %v4326_v1 = vld [vmem:[#allocation8 + $0x30] sm:$0xff]   ;;  %vm1079_vm0 = vcmask 1040384   ;;  %vm1154_vm2 = vcmask 1047552  }
  0x8b   : > { %3940 = vmatprep.subr.bf16.mxu0 %v4325_v0  ;;  %3988 = vmatprep.subr.bf16.mxu1 %v4325_v0  ;;  %v4327_v2 = vld [vmem:[#allocation8 + $0x28] sm:$0xff]   ;;  %v4328_v3 = vld [vmem:[#allocation8 + $0x20] sm:$0xff]   ;;  %v4329_v7 = vld [vmem:[#allocation8 + $0x18] sm:$0xff]   ;;  %vm1080_vm1 = vsmask.f32 256  ;;  %s5949_s25 = scalar_lea.vmem [#allocation13], %s3365_s26 }
  0x8c   : > { %3941 = vmatpush3.bf16.msra.mxu0 %v4325_v0  ;;  %3989 = vmatpush3.bf16.msra.mxu1 %v4325_v0  ;;  %v534_v4 = vld [vmem:[%s4965_s19] sm:$0xff]  ;;  %v535_v5 = vld [vmem:[%s4965_s19 + $0x8] sm:$0xff]  ;;  %v4330_v8 = vld [vmem:[#allocation8 + $0x10] sm:$0xff]   ;;  %vm1155_vm3 = vsmask.f32 7424  ;;  %s6200_s16 = sld [smem:[#allocation21_spill]] }
  0x8d   : > { %3942 = vmatprep.subr.bf16.mxu0 %v4326_v1  ;;  %3990 = vmatprep.subr.bf16.mxu1 %v4326_v1  ;;  %v566_v6 = vpack.c.bf16 %v535_v5, %v534_v4  ;;  %v846_v9 = vld [vmem:[%s4973_s17] sm:$0xff]  ;;  %v847_v10 = vld [vmem:[%s4973_s17 + $0x8] sm:$0xff]  ;;  %vm5065_vm4 = vmand %vm1154_vm2, %vm1155_vm3  ;;  %s3183_s9 = sshll.u32 %s5949_s25, 4  ;;  %s6202_s13 = sld [smem:[#allocation35_spill]]  ;;  %s6047_s9 = int_to_ptr.vmem [resolvable:$true] %s3183_s9 }
  0x8e   : > { %v4331_v11 = vld [vmem:[#allocation8 + $0x8] sm:$0xff]   ;;  %v850_v12 = vpack.c.bf16 %v847_v10, %v846_v9  ;;  %v4332_v13 = vld [vmem:[#allocation8] sm:$0xff]   ;;  %v536_v14 = vld [vmem:[%s4965_s19 + $0x10] sm:$0xff]  ;;  %s3167_s11 = scalar_lea.sflag [#allocation4], %s4959_s22  ;;  %s4607_s21 = scalar_lea.vmem %s6047_s9, 4096 }
  0x8f   : > { %3956 = vmatprep.mubr.bf16.mxu0 %v566_v6  ;;  %v537_v15 = vld [vmem:[%s4965_s19 + $0x18] sm:$0xff]  ;;  %v538_v16 = vld [vmem:[%s4965_s19 + $0x20] sm:$0xff]  ;;  %v539_v17 = vld [vmem:[%s4965_s19 + $0x28] sm:$0xff]  ;;  %p4608_p6 = scmp.ne.s32.totalorder %s6047_s9, %s4607_s21 }
  0x90   : > { %3943 = vmatpush3.bf16.msra.mxu0 %v4326_v1  ;;  %3991 = vmatpush3.bf16.msra.mxu1 %v4326_v1  ;;  %v848_v18 = vld [vmem:[%s4979_s27] sm:$0xff]  ;;  %v849_v19 = vld [vmem:[%s4979_s27 + $0x8] sm:$0xff]  ;;  %v567_v22 = vpack.c.bf16 %v537_v15, %v536_v14  ;;  %v568_v24 = vpack.c.bf16 %v539_v17, %v538_v16  ;;  %vm5071_vm5 = vmand %vm1079_vm0, %vm1080_vm1 }
  0x91   : > { %3944 = vmatprep.subr.bf16.mxu0 %v4327_v2  ;;  %3992 = vmatprep.subr.bf16.mxu1 %v4327_v2  ;;  %v4335_v20 = vld [vmem:[#allocation10 + $0x178] sm:$0xff]   ;;  %v851_v25 = vpack.c.bf16 %v849_v19, %v848_v18  ;;  %v4336_v26 = vld [vmem:[#allocation10 + $0x130] sm:$0xff]   ;;  %v542_v30 = vld [vmem:[%s4965_s19 + $0x40] sm:$0xff]  ;;  %p4609_p13 = pnand %p4608_p6, %p4815_p8 }
  0x92   : > { %4004 = vmatprep.mubr.bf16.mxu1 %v850_v12  ;;  %v4333_v21 = vld [vmem:[#allocation10 + $0x138] sm:$0xff]   ;;  %v4338_v27 = vld [vmem:[#allocation10 + $0x170] sm:$0xff]   ;;  %v543_v31 = vld [vmem:[%s4965_s19 + $0x48] sm:$0xff]  ;;  %s3472_s5 = sshll.u32 %s6200_s16, 12 }
  0x93   : > { %v4334_v23 = vld [vmem:[#allocation10 + $0xf8] sm:$0xff]   ;;  %v540_v28 = vld [vmem:[%s4965_s19 + $0x30] sm:$0xff]  ;;  %v4339_v33 = vld [vmem:[#allocation10 + $0x128] sm:$0xff]   ;;  %v570_v37 = vpack.c.bf16 %v543_v31, %v542_v30  ;;  %s6203_s26 = smov %s6202_s13  ;;  %s6045_s29 = scalar_lea.hbm %s6202_s13, %s3472_s5 }
  0x94   : > { %3945 = vmatpush3.bf16.msra.mxu0 %v4327_v2  ;;  %3993 = vmatpush3.bf16.msra.mxu1 %v4327_v2  ;;  %v541_v29 = vld [vmem:[%s4965_s19 + $0x38] sm:$0xff]  ;;  %v4337_v32 = vld [vmem:[#allocation10 + $0xf0] sm:$0xff]   ;;  %v4341_v34 = vld [vmem:[#allocation10 + $0x168] sm:$0xff]   ;;  %p4610_p3 = pneg %p4609_p13 }
  0x95   : > { %3946 = vmatprep.subr.bf16.mxu0 %v4328_v3  ;;  %3994 = vmatprep.subr.bf16.mxu1 %v4328_v3  ;;  %v569_v35 = vpack.c.bf16 %v541_v29, %v540_v28  ;;  %v4340_v36 = vld [vmem:[#allocation10 + $0xe8] sm:$0xff]   ;;  %v4342_v38 = vld [vmem:[#allocation10 + $0x120] sm:$0xff]   ;;  %v544_v39 = vld [vmem:[%s4965_s19 + $0x50] sm:$0xff] }
  0x96   : > { %v545_v40 = vld [vmem:[%s4965_s19 + $0x58] sm:$0xff]  ;;  %v546_v41 = vld [vmem:[%s4965_s19 + $0x60] sm:$0xff]  ;;  %v547_v42 = vld [vmem:[%s4965_s19 + $0x68] sm:$0xff] }
  0x97   : > { %v571_v43 = vpack.c.bf16 %v545_v40, %v544_v39  ;;  %v572_v44 = vpack.c.bf16 %v547_v42, %v546_v41  ;;  %v548_v45 = vld [vmem:[%s4965_s19 + $0x70] sm:$0xff]  ;;  %v549_v46 = vld [vmem:[%s4965_s19 + $0x78] sm:$0xff]  ;;  %v550_v47 = vld [vmem:[%s4965_s19 + $0x80] sm:$0xff] }
  0x98   : > { %3947 = vmatpush3.bf16.msra.mxu0 %v4328_v3  ;;  %3995 = vmatpush3.bf16.msra.mxu1 %v4328_v3  ;;  %v551_v48 = vld [vmem:[%s4965_s19 + $0x88] sm:$0xff]  ;;  %v573_v49 = vpack.c.bf16 %v549_v46, %v548_v45  ;;  %v552_v51 = vld [vmem:[%s4965_s19 + $0x90] sm:$0xff]  ;;  %v553_v52 = vld [vmem:[%s4965_s19 + $0x98] sm:$0xff] }
  0x99   : > { %3948 = vmatprep.subr.bf16.mxu0 %v4329_v7  ;;  %3996 = vmatprep.subr.bf16.mxu1 %v4329_v7  ;;  %v574_v50 = vpack.c.bf16 %v551_v48, %v550_v47  ;;  %v554_v53 = vld [vmem:[%s4965_s19 + $0xa0] sm:$0xff]  ;;  %v555_v54 = vld [vmem:[%s4965_s19 + $0xa8] sm:$0xff]  ;;  %v575_v55 = vpack.c.bf16 %v553_v52, %v552_v51  ;;  %v556_v57 = vld [vmem:[%s4965_s19 + $0xb0] sm:$0xff] }
  0x9a   : > { %v576_v56 = vpack.c.bf16 %v555_v54, %v554_v53  ;;  %v557_v58 = vld [vmem:[%s4965_s19 + $0xb8] sm:$0xff]  ;;  %v558_v59 = vld [vmem:[%s4965_s19 + $0xc0] sm:$0xff]  ;;  %v559_v60 = vld [vmem:[%s4965_s19 + $0xc8] sm:$0xff] }
  0x9b   : > { %v577_v61 = vpack.c.bf16 %v557_v58, %v556_v57  ;;  %v578_v62 = vpack.c.bf16 %v559_v60, %v558_v59  ;;  %v560_v63 = vld [vmem:[%s4965_s19 + $0xd0] sm:$0xff]  ;;  %v561_v0 = vld [vmem:[%s4965_s19 + $0xd8] sm:$0xff]  ;;  %v562_v1 = vld [vmem:[%s4965_s19 + $0xe0] sm:$0xff] }
  0x9c   : > { %3949 = vmatpush3.bf16.msra.mxu0 %v4329_v7  ;;  %3997 = vmatpush3.bf16.msra.mxu1 %v4329_v7  ;;  %v563_v2 = vld [vmem:[%s4965_s19 + $0xe8] sm:$0xff]  ;;  %v579_v3 = vpack.c.bf16 %v561_v0, %v560_v63  ;;  %v564_v5 = vld [vmem:[%s4965_s19 + $0xf0] sm:$0xff]  ;;  %v565_v6 = vld [vmem:[%s4965_s19 + $0xf8] sm:$0xff] }
  0x9d   : > { %3950 = vmatprep.subr.bf16.mxu0 %v4330_v8  ;;  %3998 = vmatprep.subr.bf16.mxu1 %v4330_v8  ;;  %v580_v4 = vpack.c.bf16 %v563_v2, %v562_v1  ;;  %v581_v7 = vpack.c.bf16 %v565_v6, %v564_v5  ;;  %v4344_v9 = vld [vmem:[#allocation10 + $0x160] sm:$0xff]   ;;  %v4345_v10 = vld [vmem:[#allocation10 + $0x118] sm:$0xff]   ;;  %v4349_v14 = vld [vmem:[#allocation10 + $0xd0] sm:$0xff]  }
  0x9e   : > { %v4347_v12 = vld [vmem:[#allocation10 + $0x158] sm:$0xff]   ;;  %v4350_v15 = vld [vmem:[#allocation10 + $0x150] sm:$0xff]   ;;  %v4351_v16 = vld [vmem:[#allocation10 + $0x108] sm:$0xff]  }
  0x9f   : > { %v4352_v17 = vld [vmem:[#allocation10 + $0xc8] sm:$0xff]   ;;  %v4354_v19 = vld [vmem:[#allocation10 + $0x100] sm:$0xff]  }
  0xa0   : > { %3951 = vmatpush3.bf16.msra.mxu0 %v4330_v8  ;;  %3999 = vmatpush3.bf16.msra.mxu1 %v4330_v8  ;;  %v4343_v8 = vld [vmem:[#allocation10 + $0xe0] sm:$0xff]   ;;  %v4353_v18 = vld [vmem:[#allocation10 + $0x148] sm:$0xff]  }
  0xa1   : > { %3952 = vmatprep.subr.bf16.mxu0 %v4331_v11  ;;  %4000 = vmatprep.subr.bf16.mxu1 %v4331_v11 }
  0xa4   : > { %3953 = vmatpush3.bf16.msra.mxu0 %v4331_v11  ;;  %4001 = vmatpush3.bf16.msra.mxu1 %v4331_v11  ;;  %v4346_v11 = vld [vmem:[#allocation10 + $0xd8] sm:$0xff]  }
  0xa5   : > { %3954 = vmatprep.subr.bf16.mxu0 %v4332_v13  ;;  %4002 = vmatprep.subr.bf16.mxu1 %v4332_v13 }
  0xa8   : > { %3955 = vmatpush3.bf16.msra.mxu0 %v4332_v13  ;;  %4003 = vmatpush3.bf16.msra.mxu1 %v4332_v13  ;;  %v4348_v13 = vld [vmem:[#allocation10 + $0x110] sm:$0xff]  }
  0xa9   : > { %4008 = vmatprep.subr.bf16.mxu0 %v4335_v20  ;;  %3508 = vmatprep.subr.bf16.mxu1 %v4333_v21  ;;  %v4356_v21 = vld [vmem:[#allocation10 + $0x140] sm:$0xff]  }
  0xab   : > { %3957 = vmatmul.mubr.bf16.vlgmr.msra.gmra.mxu0 %v567_v22  ;;  %4005 = vmatmul.mubr.bf16.vlgmr.msra.gmra.mxu1 %v851_v25  ;;  %v5025_v22 = vld [vmem:[#allocation10 + $0xb8] sm:$0xff]   ;;  %v5031_v25 = vld [vmem:[%s6101_s4] ss:$0 sm:$0xff] }
  0xac   : > { %3960 = vmatprep.mubr.bf16.mxu0 %v568_v24  ;;  %3509 = vmatpush3.bf16.msra.mxu1 %v4334_v23  ;;  %v4360_v23 = vld [vmem:[#allocation10 + $0x78] sm:$0xff]  }
  0xad   : > { %4009 = vmatpush3.bf16.msra.mxu0 %v4335_v20  ;;  %3510 = vmatprep.subr.bf16.mxu1 %v4336_v26  ;;  %v4355_v20 = vld [vmem:[#allocation10 + $0xc0] sm:$0xff]  }
  0xae   : > { %4010 = vmatprep.subr.bf16.mxu0 %v4338_v27 }
  0xb0   : > { %3511 = vmatpush3.bf16.msra.mxu1 %v4337_v32 }
  0xb1   : > { %4011 = vmatpush3.bf16.msra.mxu0 %v4338_v27  ;;  %3512 = vmatprep.subr.bf16.mxu1 %v4339_v33 }
  0xb2   : > { %4012 = vmatprep.subr.bf16.mxu0 %v4341_v34 }
  0xb3   : > { %3961 = vmatmul.mubr.bf16.gmra.mxu0 %v569_v35 }
  0xb4   : > { %3964 = vmatprep.mubr.bf16.mxu0 %v570_v37  ;;  %3513 = vmatpush3.bf16.msra.mxu1 %v4340_v36 }
  0xb5   : > { %4013 = vmatpush3.bf16.msra.mxu0 %v4341_v34  ;;  %3514 = vmatprep.subr.bf16.mxu1 %v4342_v38 }
  0xb6   : > { %4014 = vmatprep.subr.bf16.mxu0 %v4344_v9 }
  0xb8   : > { %3515 = vmatpush3.bf16.msra.mxu1 %v4343_v8 }
  0xb9   : > { %4015 = vmatpush3.bf16.msra.mxu0 %v4344_v9  ;;  %3516 = vmatprep.subr.bf16.mxu1 %v4345_v10 }
  0xba   : > { %4016 = vmatprep.subr.bf16.mxu0 %v4347_v12 }
  0xbb   : > { %3965 = vmatmul.mubr.bf16.gmra.mxu0 %v571_v43 }
  0xbc   : > { %3968 = vmatprep.mubr.bf16.mxu0 %v572_v44  ;;  %3517 = vmatpush3.bf16.msra.mxu1 %v4346_v11 }
  0xbd   : > { %4017 = vmatpush3.bf16.msra.mxu0 %v4347_v12  ;;  %3518 = vmatprep.subr.bf16.mxu1 %v4348_v13 }
  0xbe   : > { %4018 = vmatprep.subr.bf16.mxu0 %v4350_v15 }
  0xc0   : > { %3519 = vmatpush3.bf16.msra.mxu1 %v4349_v14 }
  0xc1   : > { %4019 = vmatpush3.bf16.msra.mxu0 %v4350_v15  ;;  %3520 = vmatprep.subr.bf16.mxu1 %v4351_v16 }
  0xc2   : > { %4020 = vmatprep.subr.bf16.mxu0 %v4353_v18 }
  0xc3   : > { %3969 = vmatmul.mubr.bf16.gmra.mxu0 %v573_v49 }
  0xc4   : > { %3972 = vmatprep.mubr.bf16.mxu0 %v574_v50  ;;  %3521 = vmatpush3.bf16.msra.mxu1 %v4352_v17 }
  0xc5   : > { %4021 = vmatpush3.bf16.msra.mxu0 %v4353_v18  ;;  %3522 = vmatprep.subr.bf16.mxu1 %v4354_v19 }
  0xc6   : > { %4022 = vmatprep.subr.bf16.mxu0 %v4356_v21 }
  0xc8   : > { %3523 = vmatpush3.bf16.msra.mxu1 %v4355_v20 }
  0xc9   : > { %4023 = vmatpush3.bf16.msra.mxu0 %v4356_v21  ;;  %4056 = vmatprep.subr.bf16.mxu1 %v5025_v22 }
  0xca   : > { %3644 = vmatprep.subr.bf16.mxu0 %v4360_v23 }
  0xcb   : > { %3973 = vmatmul.mubr.bf16.gmra.mxu0 %v575_v55 }
  0xcc   : > { %3976 = vmatprep.mubr.bf16.mxu0 %v576_v56 }
  0xd3   : > { %3977 = vmatmul.mubr.bf16.gmra.mxu0 %v577_v61 }
  0xd4   : > { %3980 = vmatprep.mubr.bf16.mxu0 %v578_v62 }
  0xdb   : > { %3981 = vmatmul.mubr.bf16.gmra.mxu0 %v579_v3 }
  0xdc   : > { %3984 = vmatprep.mubr.bf16.mxu0 %v580_v4 }
  0xe3   : > { %3985 = vmatmul.mubr.bf16.gmra.mxu0 %v581_v7 }
 0x16b   : > { %v3958_v24 = vpop.f32.mrf.mxu0  ;;  %v4006_v26 = vpop.f32.mrf.mxu1 }
 0x16c   : > { %v895_v28 = vadd.f32 %v4006_v26, %v5031_v25  ;;  %v696_v29 = vadd.f32 %v3958_v24, %v5031_v25 }
 0x16d   : > { %v687_v27 = vpop.f32.mrf.mxu0  ;;  %v886_v30 = vpop.f32.mrf.mxu1 }
 0x16e   : > { %v903_v32 = vmax.f32 %v895_v28, 0.0  ;;  %v887_v33 = vadd.f32 %v5031_v25, %v886_v30  ;;  %v688_v34 = vadd.f32 %v5031_v25, %v687_v27  ;;  %v816_v40 = vmax.f32 %v696_v29, 0.0 }
 0x16f   : > { %v3959_v31 = vpop.f32.mrf.mxu0  ;;  %v4007_v36 = vpop.f32.mrf.mxu1 }
 0x170   : > { %v699_v35 = vadd.f32 %v3959_v31, %v5031_v25  ;;  %v901_v38 = vmax.f32 %v887_v33, 0.0  ;;  %v898_v39 = vadd.f32 %v4007_v36, %v5031_v25  ;;  %v916_v45 = vmul.f32 0.0, %v903_v32  ;;  %v4358_v32 = vld [vmem:[#allocation10 + $0xb0] sm:$0xff]   ;;  %v4361_v33 = vld [vmem:[#allocation10 + $0x38] sm:$0xff]  }
 0x171   : > { %v690_v37 = vpop.f32.mrf.mxu0  ;;  %v889_v43 = vpop.f32.mrf.mxu1  ;;  %v814_v48 = vmax.f32 %v688_v34, 0.0 }
 0x172   : > { %v817_v41 = vmax.f32 %v699_v35, 0.0  ;;  %v691_v42 = vadd.f32 %v5031_v25, %v690_v37  ;;  %v904_v46 = vmax.f32 %v898_v39, 0.0  ;;  %v890_v47 = vadd.f32 %v5031_v25, %v889_v43 }
 0x173   : > { %v3962_v44 = vpop.f32.mrf.mxu0  ;;  %v909_v53 = vmul.f32 0.0, %v901_v38  ;;  %v4362_v38 = vld [vmem:[#allocation10 + $0x70] sm:$0xff]  }
 0x174   : > { %v5041_v49 = vpack.c.bf16 %v817_v41, %v816_v40  ;;  %v815_v50 = vmax.f32 %v691_v42, 0.0  ;;  %v712_v51 = vadd.f32 %v3962_v44, %v5031_v25  ;;  %v917_v54 = vmul.f32 0.0, %v904_v46 }
 0x175   : > { %v703_v52 = vpop.f32.mrf.mxu0  ;;  %v902_v55 = vmax.f32 %v890_v47, 0.0  ;;  %v4359_v47 = vld [vmem:[#allocation10 + $0xa8] sm:$0xff]  }
 0x176   : > { %v5044_v56 = vpack.c.bf16 %v815_v50, %v814_v48  ;;  %v704_v57 = vadd.f32 %v5031_v25, %v703_v52  ;;  %v950_v58 = vshrl.u32 %v5041_v49, 16  ;;  %v953_v60 = vshll.u32 %v5041_v49, 16 }
 0x177   : > { %v3963_v59 = vpop.f32.mrf.mxu0  ;;  %v5049_v61 = vpack.c.bf16 %v917_v54, %v916_v45  ;;  %v910_v62 = vmul.f32 0.0, %v902_v55  ;;  %v820_v63 = vmax.f32 %v712_v51, 0.0  ;;  %v4363_v54 = vld [vmem:[#allocation10 + $0x30] sm:$0xff]  }
 0x178   : > { %v715_v0 = vadd.f32 %v3963_v59, %v5031_v25  ;;  %1448 = vmatprep.mubr.bf16.mxu1 %v5044_v56  ;;  %v943_v1 = vshrl.u32 %v5044_v56, 16  ;;  %v946_v2 = vshll.u32 %v5044_v56, 16  ;;  %v818_v3 = vmax.f32 %v704_v57, 0.0 }
 0x179   : > { %v706_v4 = vpop.f32.mrf.mxu0  ;;  %v1104_v5 = vrot.slane %v953_v60, 1  ;;  %v952_v6 = vrot.slane %v950_v58, 7  ;;  %v5055_v7 = vpack.c.bf16 %v910_v62, %v909_v53  ;;  %v1055_v26 = vshrl.u32 %v5049_v61, 16 }
 0x17a   : > { %v821_v8 = vmax.f32 %v715_v0, 0.0  ;;  %v707_v9 = vadd.f32 %v5031_v25, %v706_v4  ;;  %v945_v10 = vrot.slane %v943_v1, 7  ;;  %v1102_v11 = vrot.slane %v946_v2, 1 }
 0x17b   : > { %v3966_v12 = vpop.f32.mrf.mxu0  ;;  %v1105_v13 = vor.u32 %v1104_v5, %v950_v58  ;;  %v936_v14 = vshrl.u32 %v5055_v7, 16  ;;  %v939_v15 = vshll.u32 %v5055_v7, 16  ;;  %v955_v31 = vor.u32 %v953_v60, %v952_v6 }
 0x17c   : > { %v5060_v16 = vpack.c.bf16 %v821_v8, %v820_v63  ;;  %v819_v17 = vmax.f32 %v707_v9, 0.0  ;;  %v728_v18 = vadd.f32 %v3966_v12, %v5031_v25  ;;  %v948_v19 = vor.u32 %v946_v2, %v945_v10  ;;  %v4368_v12 = vld [vmem:[#allocation10 + $0xa0] sm:$0xff]  }
 0x17d   : > { %v719_v21 = vpop.f32.mrf.mxu0  ;;  %v1103_v24 = vor.u32 %v1102_v11, %v943_v1  ;;  %v938_v27 = vrot.slane %v936_v14, 7  ;;  %v5090_v36 = vsel %vm5065_vm4, %v1105_v13, 0  ;;  %v5118_v1 = vsel %vm5071_vm5, 0, %v955_v31  ;;  %v4365_v11 = vld [vmem:[#allocation10 + $0x28] sm:$0xff]  }
 0x17e   : > { %v5076_v28 = vpack.c.bf16 %v819_v17, %v818_v3  ;;  %v720_v29 = vadd.f32 %v5031_v25, %v719_v21  ;;  %v5081_v30 = vsel %vm5071_vm5, 0, %v948_v19  ;;  %v967_v37 = vshll.u32 %v5060_v16, 16  ;;  %v4364_v3 = vld [vmem:[#allocation10 + $0x68] sm:$0xff]   ;;  %v4366_v17 = vld [vmem:[#allocation10 + $0x60] sm:$0xff]  }
 0x17f   : > { %v3967_v34 = vpop.f32.mrf.mxu0  ;;  %1449 = vmatmul.mubr.bf16.vlgmr.msra.gmra.mxu1 %v5081_v30  ;;  %v5086_v35 = vsel %vm5065_vm4, %v1103_v24, 0  ;;  %v5093_v39 = vor.u32 %v939_v15, %v938_v27  ;;  %v824_v40 = vmax.f32 %v728_v18, 0.0  ;;  %v964_v43 = vshrl.u32 %v5060_v16, 16 }
 0x180   : > { %v731_v41 = vadd.f32 %v3967_v34, %v5031_v25  ;;  %4024 = vmatprep.mubr.bf16.mxu0 %v5086_v35  ;;  %4057 = vmatpush3.bf16.msra.mxu1 %v5025_v22  ;;  %v960_v42 = vshll.u32 %v5076_v28, 16  ;;  %v957_v45 = vshrl.u32 %v5076_v28, 16  ;;  %v1108_v46 = vrot.slane %v967_v37, 1 }
 0x181   : > { %1456 = vmatprep.mubr.bf16.mxu1 %v5041_v49  ;;  %4025 = vmatmul.mubr.bf16.vlgmr.msra.gmra.mxu0 %v5090_v36  ;;  %v722_v44 = vpop.f32.mrf.mxu0  ;;  %v1100_v22 = vrot.slane %v939_v15, 1  ;;  %v822_v50 = vmax.f32 %v720_v29, 0.0  ;;  %v1057_v5 = vrot.slane %v1055_v26, 7  ;;  %v1058_v18 = vshll.u32 %v5049_v61, 16 }
 0x182   : > { %v825_v51 = vmax.f32 %v731_v41, 0.0  ;;  %v723_v52 = vadd.f32 %v5031_v25, %v722_v44  ;;  %v1106_v53 = vrot.slane %v960_v42, 1  ;;  %4058 = vmatprep.subr.bf16.mxu1 %v4358_v32  ;;  %3645 = vmatpush3.bf16.msra.mxu0 %v4361_v33  ;;  %v1109_v57 = vor.u32 %v1108_v46, %v964_v43  ;;  %v4377_v33 = vld [vmem:[#allocation10 + $0x98] sm:$0xff]   ;;  %v4367_v46 = vld [vmem:[#allocation10 + $0x20] sm:$0xff]  }
 0x183   : > { %v3970_v55 = vpop.f32.mrf.mxu0  ;;  %3646 = vmatprep.subr.bf16.mxu0 %v4362_v38  ;;  %v5111_v58 = vor.u32 %v1100_v22, %v936_v14  ;;  %v959_v2 = vrot.slane %v957_v45, 7  ;;  %v5148_v34 = vor.u32 %v1058_v18, %v1057_v5  ;;  %v1134_v38 = vrot.slane %v1058_v18, 1  ;;  %v4370_v5 = vld [vmem:[#allocation10 + $0x18] sm:$0xff]  }
 0x184   : > { %v5113_v59 = vpack.c.bf16 %v825_v51, %v824_v40  ;;  %v823_v60 = vmax.f32 %v723_v52, 0.0  ;;  %v744_v62 = vadd.f32 %v3970_v55, %v5031_v25  ;;  %v1107_v63 = vor.u32 %v1106_v53, %v957_v45  ;;  %4059 = vmatpush3.bf16.msra.mxu1 %v4358_v32  ;;  %v4369_v55 = vld [vmem:[#allocation10 + $0x58] sm:$0xff]  }
 0x185   : > { %v735_v0 = vpop.f32.mrf.mxu0  ;;  %4060 = vmatprep.subr.bf16.mxu1 %v4359_v47  ;;  %v5134_v10 = vsel %vm5065_vm4, %v1109_v57, 0  ;;  %v962_v31 = vor.u32 %v960_v42, %v959_v2 }
 0x186   : > { %v5125_v6 = vpack.c.bf16 %v823_v60, %v822_v50  ;;  %v736_v8 = vadd.f32 %v5031_v25, %v735_v0  ;;  %v5130_v9 = vsel %vm5065_vm4, %v1107_v63, 0  ;;  %3647 = vmatpush3.bf16.msra.mxu0 %v4363_v54  ;;  %v978_v14 = vshrl.u32 %v5113_v59, 16 }
 0x187   : > { %v3971_v13 = vpop.f32.mrf.mxu0  ;;  %1457 = vmatmul.mubr.bf16.gmra.mxu1 %v5118_v1  ;;  %4028 = vmatprep.mubr.bf16.mxu0 %v5130_v9  ;;  %v981_v15 = vshll.u32 %v5113_v59, 16  ;;  %v828_v19 = vmax.f32 %v744_v62, 0.0  ;;  %v5160_v50 = vor.u32 %v1134_v38, %v1055_v26  ;;  %v5169_v60 = vsel %vm5071_vm5, 0, %v962_v31 }
 0x188   : > { %v747_v21 = vadd.f32 %v3971_v13, %v5031_v25  ;;  %1464 = vmatprep.mubr.bf16.mxu1 %v5076_v28  ;;  %v971_v24 = vshrl.u32 %v5125_v6, 16  ;;  %v974_v27 = vshll.u32 %v5125_v6, 16  ;;  %4061 = vmatpush3.bf16.msra.mxu1 %v4359_v47  ;;  %v826_v40 = vmax.f32 %v736_v8, 0.0  ;;  %v4371_v13 = vld [vmem:[#allocation10 + $0x50] sm:$0xff]  }
 0x189   : > { %4029 = vmatmul.mubr.bf16.gmra.mxu0 %v5134_v10  ;;  %v738_v29 = vpop.f32.mrf.mxu0  ;;  %v1112_v32 = vrot.slane %v981_v15, 1  ;;  %3648 = vmatprep.subr.bf16.mxu0 %v4364_v3  ;;  %6175 = vst [vmem:[#allocation27_spill] sm:$0xff] %v5160_v50  ;;  %v966_v62 = vrot.slane %v964_v43, 7  ;;  %v4378_v43 = vld [vmem:[#allocation10 + $0x90] sm:$0xff]   ;;  %v980_v22 = vrot.slane %v978_v14, 7 }
 0x18a   : > { %v829_v41 = vmax.f32 %v747_v21, 0.0  ;;  %v739_v44 = vadd.f32 %v5031_v25, %v738_v29  ;;  %v1110_v45 = vrot.slane %v974_v27, 1  ;;  %3649 = vmatpush3.bf16.msra.mxu0 %v4365_v11  ;;  %4062 = vmatprep.subr.bf16.mxu1 %v4368_v12 }
 0x18b   : > { %v3974_v47 = vpop.f32.mrf.mxu0  ;;  %v1113_v42 = vor.u32 %v1112_v32, %v978_v14  ;;  %3650 = vmatprep.subr.bf16.mxu0 %v4366_v17  ;;  %v969_v31 = vor.u32 %v967_v37, %v966_v62  ;;  %v973_v62 = vrot.slane %v971_v24, 7 }
 0x18c   : > { %v5162_v51 = vpack.c.bf16 %v829_v41, %v828_v19  ;;  %v827_v52 = vmax.f32 %v739_v44, 0.0  ;;  %v760_v53 = vadd.f32 %v3974_v47, %v5031_v25  ;;  %v1111_v54 = vor.u32 %v1110_v45, %v971_v24  ;;  %4063 = vmatpush3.bf16.msra.mxu1 %v4368_v12  ;;  %v4372_v45 = vld [vmem:[#allocation10 + $0x10] sm:$0xff]  }
 0x18d   : > { %v751_v57 = vpop.f32.mrf.mxu0  ;;  %4064 = vmatprep.subr.bf16.mxu1 %v4377_v33  ;;  %v5185_v3 = vsel %vm5065_vm4, %v1113_v42, 0 }
 0x18e   : > { %v5176_v63 = vpack.c.bf16 %v827_v52, %v826_v40  ;;  %v752_v0 = vadd.f32 %v5031_v25, %v751_v57  ;;  %v5181_v2 = vsel %vm5065_vm4, %v1111_v54, 0  ;;  %3651 = vmatpush3.bf16.msra.mxu0 %v4367_v46  ;;  %v992_v11 = vshrl.u32 %v5162_v51, 16  ;;  %v4379_v46 = vld [vmem:[#allocation10 + $0x88] sm:$0xff]  }
 0x18f   : > { %v3975_v8 = vpop.f32.mrf.mxu0  ;;  %1465 = vmatmul.mubr.bf16.gmra.mxu1 %v5169_v60  ;;  %4032 = vmatprep.mubr.bf16.mxu0 %v5181_v2  ;;  %v995_v12 = vshll.u32 %v5162_v51, 16  ;;  %v832_v17 = vmax.f32 %v760_v53, 0.0  ;;  %v4373_v54 = vld [vmem:[#allocation10 + $0x48] sm:$0xff]   ;;  %v5212_v57 = vsel %vm5071_vm5, 0, %v969_v31  ;;  %v4375_v31 = vld [vmem:[#allocation10 + $0x40] sm:$0xff]  }
 0x190   : > { %v763_v18 = vadd.f32 %v3975_v8, %v5031_v25  ;;  %1472 = vmatprep.mubr.bf16.mxu1 %v5060_v16  ;;  %v985_v19 = vshrl.u32 %v5176_v63, 16  ;;  %v988_v21 = vshll.u32 %v5176_v63, 16  ;;  %3652 = vmatprep.subr.bf16.mxu0 %v4369_v55  ;;  %v830_v38 = vmax.f32 %v752_v0, 0.0 }
 0x191   : > { %4033 = vmatmul.mubr.bf16.gmra.mxu0 %v5185_v3  ;;  %v754_v29 = vpop.f32.mrf.mxu0  ;;  %v1116_v32 = vrot.slane %v995_v12, 1  ;;  %4065 = vmatpush3.bf16.msra.mxu1 %v4377_v33 }
 0x192   : > { %v833_v40 = vmax.f32 %v763_v18, 0.0  ;;  %v755_v41 = vadd.f32 %v5031_v25, %v754_v29  ;;  %v1114_v44 = vrot.slane %v988_v21, 1  ;;  %3653 = vmatpush3.bf16.msra.mxu0 %v4370_v5  ;;  %4066 = vmatprep.subr.bf16.mxu1 %v4378_v43  ;;  %v4380_v18 = vld [vmem:[#allocation10 + $0x80] sm:$0xff]  }
 0x193   : > { %v3978_v47 = vpop.f32.mrf.mxu0  ;;  %v1117_v42 = vor.u32 %v1116_v32, %v992_v11  ;;  %3654 = vmatprep.subr.bf16.mxu0 %v4371_v13 }
 0x194   : > { %v5205_v37 = vpack.c.bf16 %v833_v40, %v832_v17  ;;  %v831_v52 = vmax.f32 %v755_v41, 0.0  ;;  %v776_v33 = vadd.f32 %v3978_v47, %v5031_v25  ;;  %v1115_v53 = vor.u32 %v1114_v44, %v985_v19  ;;  %v4374_v17 = vld [vmem:[#allocation10 + $0x8] sm:$0xff]  }
 0x195   : > { %v767_v55 = vpop.f32.mrf.mxu0  ;;  %4067 = vmatpush3.bf16.msra.mxu1 %v4378_v43  ;;  %v5225_v13 = vsel %vm5065_vm4, %v1117_v42, 0 }
 0x196   : > { %v5216_v0 = vpack.c.bf16 %v831_v52, %v830_v38  ;;  %v768_v5 = vadd.f32 %v5031_v25, %v767_v55  ;;  %v5221_v8 = vsel %vm5065_vm4, %v1115_v53, 0  ;;  %3655 = vmatpush3.bf16.msra.mxu0 %v4372_v45  ;;  %4068 = vmatprep.subr.bf16.mxu1 %v4379_v46  ;;  %v6126_v24 = vshrl.u32 %v5205_v37, 16  ;;  %v4376_v55 = vld [vmem:[#allocation10] sm:$0xff]  }
 0x197   : > { %v3979_v29 = vpop.f32.mrf.mxu0  ;;  %1473 = vmatmul.mubr.bf16.gmra.mxu1 %v5212_v57  ;;  %4036 = vmatprep.mubr.bf16.mxu0 %v5221_v8  ;;  %v6125_v43 = vshll.u32 %v5205_v37, 16  ;;  %v836_v32 = vmax.f32 %v776_v33, 0.0  ;;  %v976_v45 = vor.u32 %v974_v27, %v973_v62 }
 0x198   : > { %v779_v38 = vadd.f32 %v3979_v29, %v5031_v25  ;;  %1480 = vmatprep.mubr.bf16.mxu1 %v5125_v6  ;;  %v6132_v40 = vshrl.u32 %v5216_v0, 16  ;;  %v6131_v41 = vshll.u32 %v5216_v0, 16  ;;  %3656 = vmatprep.subr.bf16.mxu0 %v4373_v54  ;;  %v834_v42 = vmax.f32 %v768_v5, 0.0  ;;  %v4381_v54 = vld [vmem:[#allocation10 + $0x1f8] sm:$0xff]  }
 0x199   : > { %4037 = vmatmul.mubr.bf16.gmra.mxu0 %v5225_v13  ;;  %v770_v44 = vpop.f32.mrf.mxu0  ;;  %v1120_v47 = vrot.slane %v6125_v43, 1  ;;  %4069 = vmatpush3.bf16.msra.mxu1 %v4379_v46 }
 0x19a   : > { %v837_v52 = vmax.f32 %v779_v38, 0.0  ;;  %v771_v33 = vadd.f32 %v5031_v25, %v770_v44  ;;  %v1118_v53 = vrot.slane %v6131_v41, 1  ;;  %3657 = vmatpush3.bf16.msra.mxu0 %v4374_v17  ;;  %4070 = vmatprep.subr.bf16.mxu1 %v4380_v18  ;;  %v5250_v38 = vld [vmem:[#allocation10 + $0x238] sm:$0xff]   ;;  %v5254_v17 = vsel %vm5071_vm5, 0, %v976_v45 }
 0x19b   : > { %v3982_v29 = vpop.f32.mrf.mxu0  ;;  %v1121_v26 = vor.u32 %v1120_v47, %v6126_v24  ;;  %3658 = vmatprep.subr.bf16.mxu0 %v4375_v31 }
 0x19c   : > { %v5245_v27 = vpack.c.bf16 %v837_v52, %v836_v32  ;;  %v835_v62 = vmax.f32 %v771_v33, 0.0  ;;  %v792_v46 = vadd.f32 %v3982_v29, %v5031_v25  ;;  %v1119_v5 = vor.u32 %v1118_v53, %v6132_v40 }
 0x19d   : > { %v783_v44 = vpop.f32.mrf.mxu0  ;;  %4071 = vmatpush3.bf16.msra.mxu1 %v4380_v18  ;;  %v5267_v52 = vsel %vm5065_vm4, %v1121_v26, 0 }
 0x19e   : > { %v5258_v31 = vpack.c.bf16 %v835_v62, %v834_v42  ;;  %v784_v32 = vadd.f32 %v5031_v25, %v783_v44  ;;  %v5263_v47 = vsel %vm5065_vm4, %v1119_v5, 0  ;;  %3659 = vmatpush3.bf16.msra.mxu0 %v4376_v55  ;;  %3780 = vmatprep.subr.bf16.mxu1 %v4381_v54  ;;  %v6128_v14 = vshrl.u32 %v5245_v27, 16 }
 0x19f   : > { %v3983_v45 = vpop.f32.mrf.mxu0  ;;  %1481 = vmatmul.mubr.bf16.gmra.mxu1 %v5254_v17  ;;  %4040 = vmatprep.mubr.bf16.mxu0 %v5263_v47  ;;  %v6127_v18 = vshll.u32 %v5245_v27, 16  ;;  %v840_v42 = vmax.f32 %v792_v46, 0.0  ;;  %v983_v54 = vor.u32 %v981_v15, %v980_v22 }
 0x1a0   : > { %v795_v33 = vadd.f32 %v3983_v45, %v5031_v25  ;;  %1488 = vmatprep.mubr.bf16.mxu1 %v5113_v59  ;;  %v6130_v53 = vshrl.u32 %v5258_v31, 16  ;;  %v6129_v26 = vshll.u32 %v5258_v31, 16  ;;  %4104 = vmatprep.subr.bf16.mxu0 %v5250_v38  ;;  %v838_v62 = vmax.f32 %v784_v32, 0.0 }
 0x1a1   : > { %4041 = vmatmul.mubr.bf16.gmra.mxu0 %v5267_v52  ;;  %v786_v55 = vpop.f32.mrf.mxu0  ;;  %v1124_v29 = vrot.slane %v6127_v18, 1  ;;  %v5295_v32 = vsel %vm5071_vm5, 0, %v983_v54 }
 0x1a2   : > { %v841_v46 = vmax.f32 %v795_v33, 0.0  ;;  %v787_v5 = vadd.f32 %v5031_v25, %v786_v55  ;;  %v1122_v44 = vrot.slane %v6129_v26, 1  ;;  %v987_v33 = vrot.slane %v985_v19, 7 }
 0x1a3   : > { %v3986_v45 = vpop.f32.mrf.mxu0  ;;  %v1125_v4 = vor.u32 %v1124_v29, %v6128_v14 }
 0x1a4   : > { %v5288_v43 = vpack.c.bf16 %v841_v46, %v840_v42  ;;  %v839_v48 = vmax.f32 %v787_v5, 0.0  ;;  %v808_v24 = vadd.f32 %v3986_v45, %v5031_v25  ;;  %v1123_v15 = vor.u32 %v1122_v44, %v6130_v53 }
 0x1a5   : > { %v799_v22 = vpop.f32.mrf.mxu0  ;;  %v5308_v46 = vsel %vm5065_vm4, %v1125_v4, 0 }
 0x1a6   : > { %v5299_v55 = vpack.c.bf16 %v839_v48, %v838_v62  ;;  %v800_v29 = vadd.f32 %v5031_v25, %v799_v22  ;;  %v5304_v42 = vsel %vm5065_vm4, %v1123_v15, 0  ;;  %v6134_v54 = vshrl.u32 %v5288_v43, 16 }
 0x1a7   : > { %v3987_v5 = vpop.f32.mrf.mxu0  ;;  %1489 = vmatmul.mubr.bf16.gmra.mxu1 %v5295_v32  ;;  %4044 = vmatprep.mubr.bf16.mxu0 %v5304_v42  ;;  %v6133_v48 = vshll.u32 %v5288_v43, 16  ;;  %v844_v19 = vmax.f32 %v808_v24, 0.0  ;;  %v990_v15 = vor.u32 %v988_v21, %v987_v33 }
 0x1a8   : > { %v811_v62 = vadd.f32 %v3987_v5, %v5031_v25  ;;  %1496 = vmatprep.mubr.bf16.mxu1 %v5176_v63  ;;  %v1027_v44 = vshrl.u32 %v5299_v55, 16  ;;  %v1030_v45 = vshll.u32 %v5299_v55, 16  ;;  %v842_v18 = vmax.f32 %v800_v29, 0.0 }
 0x1a9   : > { %4045 = vmatmul.mubr.bf16.gmra.mxu0 %v5308_v46  ;;  %v802_v4 = vpop.f32.mrf.mxu0  ;;  %v1128_v22 = vrot.slane %v6133_v48, 1  ;;  %v5334_v21 = vsel %vm5071_vm5, 0, %v990_v15 }
 0x1aa   : > { %v845_v14 = vmax.f32 %v811_v62, 0.0  ;;  %v803_v24 = vadd.f32 %v5031_v25, %v802_v4  ;;  %v1126_v5 = vrot.slane %v1030_v45, 1  ;;  %v994_v25 = vrot.slane %v992_v11, 7 }
 0x1ab   : > { %v1129_v26 = vor.u32 %v1128_v22, %v6134_v54 }
 0x1ac   : > { %v5328_v53 = vpack.c.bf16 %v845_v14, %v844_v19  ;;  %v843_v41 = vmax.f32 %v803_v24, 0.0  ;;  %v1127_v40 = vor.u32 %v1126_v5, %v1027_v44 }
 0x1ad   : > { %v5338_v33 = vsel %vm5065_vm4, %v1129_v26, 0 }
 0x1ae   : > { %v5342_v29 = vpack.c.bf16 %v843_v41, %v842_v18  ;;  %v5346_v14 = vsel %vm5065_vm4, %v1127_v40, 0  ;;  %v1048_v19 = vshrl.u32 %v5328_v53, 16  ;;  %v1051_v62 = vshll.u32 %v5328_v53, 16 }
 0x1af   : > { %1497 = vmatmul.mubr.bf16.gmra.mxu1 %v5334_v21  ;;  %4048 = vmatprep.mubr.bf16.mxu0 %v5346_v14  ;;  %v997_v40 = vor.u32 %v995_v12, %v994_v25  ;;  %v6177_v25 = vshrl.u32 %v5216_v0, 16 }
 0x1b0   : > { %1504 = vmatprep.mubr.bf16.mxu1 %v5162_v51  ;;  %v1041_v26 = vshrl.u32 %v5342_v29, 16  ;;  %v6135_v11 = vshll.u32 %v5342_v29, 16  ;;  %v1132_v41 = vrot.slane %v1051_v62, 1  ;;  %v1050_v18 = vrot.slane %v1048_v19, 7 }
 0x1b1   : > { %4049 = vmatmul.mubr.bf16.gmra.mxu0 %v5338_v33  ;;  %v5368_v48 = vsel %vm5071_vm5, 0, %v997_v40  ;;  %v6179_v40 = vshrl.u32 %v5205_v37, 16  ;;  %v6188_v50 = vshll.u32 %v5342_v29, 16 }
 0x1b2   : > { %v1130_v4 = vrot.slane %v6135_v11, 1  ;;  %v1133_v15 = vor.u32 %v1132_v41, %v1048_v19  ;;  %v1053_v22 = vor.u32 %v1051_v62, %v1050_v18  ;;  %v1001_v19 = vrot.slane %v6177_v25, 7  ;;  %v5406_v25 = vld [vmem:[#allocation10 + $0x228] sm:$0xff]  }
 0x1b3   : > { %v6178_v62 = vshll.u32 %v5216_v0, 16 }
 0x1b4   : > { %v1131_v24 = vor.u32 %v1130_v4, %v1041_v26  ;;  %v5364_v5 = vsel %vm5071_vm5, 0, %v1053_v22  ;;  %v5376_v12 = vsel %vm5065_vm4, %v1133_v15, 0  ;;  %v1008_v4 = vrot.slane %v6179_v40, 7  ;;  %v5394_v15 = vld [vmem:[#allocation10 + $0x230] sm:$0xff]  }
 0x1b5   : > { %6176 = vst [vmem:[#allocation28_spill] sm:$0xff] %v5376_v12  ;;  %v1004_v41 = vor.u32 %v6178_v62, %v1001_v19  ;;  %v6180_v22 = vsel %vm5071_vm5, 0, %v5093_v39  ;;  %v6182_v62 = vshrl.u32 %v5258_v31, 16  ;;  %v6183_v39 = vshll.u32 %v5258_v31, 16 }
 0x1b6   : > { %v5372_v54 = vsel %vm5065_vm4, %v1131_v24, 0 }
 0x1b7   : > { %1505 = vmatmul.mubr.bf16.gmra.mxu1 %v5368_v48  ;;  %4052 = vmatprep.mubr.bf16.mxu0 %v5372_v54  ;;  %v5389_v18 = vsel %vm5071_vm5, 0, %v1004_v41  ;;  %v1015_v41 = vrot.slane %v6182_v62, 7  ;;  %v6185_v62 = vshll.u32 %v5245_v27, 16 }
 0x1b8   : > { %1512 = vmatprep.mubr.bf16.mxu1 %v5216_v0 }
 0x1b9   : > { %4053 = vmatmul.mubr.bf16.gmra.mxu0 %v5376_v12  ;;  %v1018_v40 = vor.u32 %v6183_v39, %v1015_v41  ;;  %v5446_v39 = vld [vmem:[#allocation10 + $0x208] sm:$0xff]  }
 0x1ba   : > { %1914 = vmatprep.mubr.bf16.mxu0 %v5055_v7  ;;  %v6181_v7 = vshll.u32 %v5205_v37, 16 }
 0x1bc   : > { %v1011_v24 = vor.u32 %v6181_v7, %v1008_v4  ;;  %v5426_v4 = vld [vmem:[#allocation10 + $0x218] sm:$0xff]   ;;  %v6184_v7 = vshrl.u32 %v5245_v27, 16 }
 0x1be   : > { %v5410_v19 = vsel %vm5071_vm5, 0, %v1011_v24  ;;  %v1022_v24 = vrot.slane %v6184_v7, 7  ;;  %v1029_v7 = vrot.slane %v1027_v44, 7 }
 0x1bf   : > { %1513 = vmatmul.mubr.bf16.gmra.mxu1 %v5389_v18 }
 0x1c0   : > { %1520 = vmatprep.mubr.bf16.mxu1 %v5205_v37  ;;  %v1025_v41 = vor.u32 %v6185_v62, %v1022_v24  ;;  %v5457_v24 = vld [vmem:[#allocation10 + $0x200] sm:$0xff]   ;;  %v1032_v62 = vor.u32 %v1030_v45, %v1029_v7  ;;  %v6187_v45 = vshll.u32 %v5288_v43, 16 }
 0x1c1   : > { %1915 = vmatmul.mubr.bf16.vlgmr.msra.gmra.mxu0 %v6180_v22  ;;  %v5430_v22 = vsel %vm5071_vm5, 0, %v1018_v40 }
 0x1c2   : > { %1922 = vmatprep.mubr.bf16.mxu0 %v5044_v56  ;;  %4105 = vmatpush3.bf16.msra.mxu0 %v5250_v38  ;;  %v5417_v56 = vld [vmem:[#allocation10 + $0x220] sm:$0xff]   ;;  %v5450_v40 = vsel %vm5071_vm5, 0, %v1025_v41  ;;  %v5468_v44 = vsel %vm5071_vm5, 0, %v1032_v62  ;;  %v6186_v41 = vshrl.u32 %v5288_v43, 16 }
 0x1c3   : > { %4106 = vmatprep.subr.bf16.mxu0 %v5394_v15 }
 0x1c4   : > { %v1036_v11 = vrot.slane %v6186_v41, 7  ;;  %v1043_v41 = vrot.slane %v1041_v26, 7  ;;  %v6189_v26 = vsel %vm5065_vm4, %v5111_v58, 0  ;;  %v4387_v58 = vld [vmem:[#allocation10 + $0x1a8] sm:$0xff]  }
 0x1c6   : > { %4107 = vmatpush3.bf16.msra.mxu0 %v5394_v15  ;;  %v1039_v7 = vor.u32 %v6187_v45, %v1036_v11  ;;  %v1046_v12 = vor.u32 %v6188_v50, %v1043_v41  ;;  %v4382_v50 = vld [vmem:[#allocation10 + $0x1b8] sm:$0xff]   ;;  %v4384_v45 = vld [vmem:[#allocation10 + $0x1b0] sm:$0xff]   ;;  %v4388_v41 = vld [vmem:[#allocation10 + $0x1e0] sm:$0xff]  }
 0x1c7   : > { %1521 = vmatmul.mubr.bf16.gmra.mxu1 %v5410_v19  ;;  %4108 = vmatprep.subr.bf16.mxu0 %v5406_v25 }
 0x1c8   : > { %1528 = vmatprep.mubr.bf16.mxu1 %v5258_v31  ;;  %v5481_v62 = vsel %vm5071_vm5, 0, %v1039_v7  ;;  %v5493_v11 = vsel %vm5071_vm5, 0, %v1046_v12  ;;  %v4383_v12 = vld [vmem:[#allocation10 + $0x1f0] sm:$0xff]   ;;  %v4385_v7 = vld [vmem:[#allocation10 + $0x1e8] sm:$0xff]  }
 0x1c9   : > { %1923 = vmatmul.mubr.bf16.gmra.mxu0 %v5081_v30  ;;  %v5437_v30 = vld [vmem:[#allocation10 + $0x210] sm:$0xff]  }
 0x1ca   : > { %1930 = vmatprep.mubr.bf16.mxu0 %v5041_v49  ;;  %4109 = vmatpush3.bf16.msra.mxu0 %v5406_v25 }
 0x1cb   : > { %4110 = vmatprep.subr.bf16.mxu0 %v5417_v56 }
 0x1ce   : > { %4111 = vmatpush3.bf16.msra.mxu0 %v5417_v56 }
 0x1cf   : > { %1529 = vmatmul.mubr.bf16.gmra.mxu1 %v5430_v22  ;;  %4112 = vmatprep.subr.bf16.mxu0 %v5426_v4 }
 0x1d0   : > { %1536 = vmatprep.mubr.bf16.mxu1 %v5245_v27 }
 0x1d1   : > { %1931 = vmatmul.mubr.bf16.gmra.mxu0 %v5118_v1 }
 0x1d2   : > { %1938 = vmatprep.mubr.bf16.mxu0 %v5076_v28  ;;  %4113 = vmatpush3.bf16.msra.mxu0 %v5426_v4 }
 0x1d3   : > { %4114 = vmatprep.subr.bf16.mxu0 %v5437_v30 }
 0x1d6   : > { %4115 = vmatpush3.bf16.msra.mxu0 %v5437_v30 }
 0x1d7   : > { %1537 = vmatmul.mubr.bf16.gmra.mxu1 %v5450_v40  ;;  %4116 = vmatprep.subr.bf16.mxu0 %v5446_v39 }
 0x1d8   : > { %1544 = vmatprep.mubr.bf16.mxu1 %v5299_v55 }
 0x1d9   : > { %1939 = vmatmul.mubr.bf16.gmra.mxu0 %v5169_v60 }
 0x1da   : > { %1946 = vmatprep.mubr.bf16.mxu0 %v5060_v16  ;;  %4117 = vmatpush3.bf16.msra.mxu0 %v5446_v39 }
 0x1db   : > { %4118 = vmatprep.subr.bf16.mxu0 %v5457_v24 }
 0x1de   : > { %4119 = vmatpush3.bf16.msra.mxu0 %v5457_v24 }
 0x1df   : > { %1545 = vmatmul.mubr.bf16.gmra.mxu1 %v5468_v44 }
 0x1e0   : > { %1552 = vmatprep.mubr.bf16.mxu1 %v5288_v43 }
 0x1e1   : > { %1947 = vmatmul.mubr.bf16.gmra.mxu0 %v5212_v57 }
 0x1e2   : > { %1954 = vmatprep.mubr.bf16.mxu0 %v5125_v6 }
 0x1e7   : > { %1553 = vmatmul.mubr.bf16.gmra.mxu1 %v5481_v62 }
 0x1e8   : > { %1560 = vmatprep.mubr.bf16.mxu1 %v5342_v29 }
 0x1e9   : > { %1955 = vmatmul.mubr.bf16.gmra.mxu0 %v5254_v17 }
 0x1ea   : > { %1962 = vmatprep.mubr.bf16.mxu0 %v5113_v59 }
 0x1ef   : > { %1561 = vmatmul.mubr.bf16.gmra.mxu1 %v5493_v11 }
 0x1f0   : > { %1568 = vmatprep.mubr.bf16.mxu1 %v5328_v53 }
 0x1f1   : > { %1963 = vmatmul.mubr.bf16.gmra.mxu0 %v5295_v32 }
 0x1f2   : > { %1970 = vmatprep.mubr.bf16.mxu0 %v5176_v63 }
 0x1f7   : > { %1569 = vmatmul.mubr.bf16.gmra.mxu1 %v5364_v5 }
 0x1f8   : > { %4072 = vmatprep.mubr.bf16.mxu1 %v6189_v26  ;;  %v4390_v26 = vld [vmem:[#allocation10 + $0x1d8] sm:$0xff]  }
 0x1f9   : > { %1971 = vmatmul.mubr.bf16.gmra.mxu0 %v5334_v21 }
 0x1fa   : > { %1978 = vmatprep.mubr.bf16.mxu0 %v5162_v51 }
 0x1ff   : > { %4073 = vmatmul.mubr.bf16.vlgmr.msra.gmra.mxu1 %v5086_v35  ;;  %v4389_v35 = vld [vmem:[#allocation10 + $0x1a0] sm:$0xff]  }
 0x200   : > { %3781 = vmatpush3.bf16.msra.mxu1 %v4382_v50  ;;  %4076 = vmatprep.mubr.bf16.mxu1 %v5090_v36  ;;  %v4392_v50 = vld [vmem:[#allocation10 + $0x198] sm:$0xff]  }
 0x201   : > { %1979 = vmatmul.mubr.bf16.gmra.mxu0 %v5368_v48  ;;  %3782 = vmatprep.subr.bf16.mxu1 %v4383_v12  ;;  %v4393_v12 = vld [vmem:[#allocation10 + $0x1d0] sm:$0xff]  }
 0x202   : > { %1986 = vmatprep.mubr.bf16.mxu0 %v5216_v0 }
 0x204   : > { %3783 = vmatpush3.bf16.msra.mxu1 %v4384_v45  ;;  %v4394_v45 = vld [vmem:[#allocation10 + $0x190] sm:$0xff]  }
 0x205   : > { %3784 = vmatprep.subr.bf16.mxu1 %v4385_v7  ;;  %v4397_v7 = vld [vmem:[#allocation10 + $0x1c8] sm:$0xff]  }
 0x207   : > { %4077 = vmatmul.mubr.bf16.gmra.mxu1 %v5130_v9 }
 0x208   : > { %4080 = vmatprep.mubr.bf16.mxu1 %v5134_v10  ;;  %3785 = vmatpush3.bf16.msra.mxu1 %v4387_v58  ;;  %v4398_v58 = vld [vmem:[#allocation10 + $0x188] sm:$0xff]  }
 0x209   : > { %1987 = vmatmul.mubr.bf16.gmra.mxu0 %v5389_v18  ;;  %3786 = vmatprep.subr.bf16.mxu1 %v4388_v41  ;;  %v4401_v41 = vld [vmem:[#allocation10 + $0x1c0] sm:$0xff]  }
 0x20a   : > { %1994 = vmatprep.mubr.bf16.mxu0 %v5205_v37 }
 0x20c   : > { %3787 = vmatpush3.bf16.msra.mxu1 %v4389_v35  ;;  %v4402_v35 = vld [vmem:[#allocation10 + $0x180] sm:$0xff]  }
 0x20d   : > { %3788 = vmatprep.subr.bf16.mxu1 %v4390_v26 }
 0x20f   : > { %4081 = vmatmul.mubr.bf16.gmra.mxu1 %v5181_v2 }
 0x210   : > { %4084 = vmatprep.mubr.bf16.mxu1 %v5185_v3  ;;  %3789 = vmatpush3.bf16.msra.mxu1 %v4392_v50 }
 0x211   : > { %1995 = vmatmul.mubr.bf16.gmra.mxu0 %v5410_v19  ;;  %3790 = vmatprep.subr.bf16.mxu1 %v4393_v12 }
 0x212   : > { %2002 = vmatprep.mubr.bf16.mxu0 %v5258_v31 }
 0x214   : > { %3791 = vmatpush3.bf16.msra.mxu1 %v4394_v45 }
 0x215   : > { %3792 = vmatprep.subr.bf16.mxu1 %v4397_v7 }
 0x217   : > { %4085 = vmatmul.mubr.bf16.gmra.mxu1 %v5221_v8 }
 0x218   : > { %4088 = vmatprep.mubr.bf16.mxu1 %v5225_v13  ;;  %3793 = vmatpush3.bf16.msra.mxu1 %v4398_v58 }
 0x219   : > { %2003 = vmatmul.mubr.bf16.gmra.mxu0 %v5430_v22  ;;  %3794 = vmatprep.subr.bf16.mxu1 %v4401_v41 }
 0x21a   : > { %2010 = vmatprep.mubr.bf16.mxu0 %v5245_v27 }
 0x21c   : > { %3795 = vmatpush3.bf16.msra.mxu1 %v4402_v35 }
 0x21d   : > { %4200 = vmatprep.subr.bf16.mxu1 %v5250_v38 }
 0x21f   : > { %4089 = vmatmul.mubr.bf16.gmra.mxu1 %v5263_v47 }
 0x220   : > { %4092 = vmatprep.mubr.bf16.mxu1 %v5267_v52 }
 0x221   : > { %2011 = vmatmul.mubr.bf16.gmra.mxu0 %v5450_v40 }
 0x222   : > { %2018 = vmatprep.mubr.bf16.mxu0 %v5299_v55 }
 0x227   : > { %4093 = vmatmul.mubr.bf16.gmra.mxu1 %v5304_v42 }
 0x228   : > { %4096 = vmatprep.mubr.bf16.mxu1 %v5308_v46 }
 0x229   : > { %2019 = vmatmul.mubr.bf16.gmra.mxu0 %v5468_v44 }
 0x22a   : > { %2026 = vmatprep.mubr.bf16.mxu0 %v5288_v43 }
 0x22f   : > { %4097 = vmatmul.mubr.bf16.gmra.mxu1 %v5346_v14 }
 0x230   : > { %4100 = vmatprep.mubr.bf16.mxu1 %v5338_v33 }
 0x231   : > { %2027 = vmatmul.mubr.bf16.gmra.mxu0 %v5481_v62 }
 0x232   : > { %2034 = vmatprep.mubr.bf16.mxu0 %v5342_v29 }
 0x237   : > { %4101 = vmatmul.mubr.bf16.gmra.mxu1 %v5372_v54 }
 0x238   : > { %2429 = vmatprep.mubr.bf16.mxu1 %v5041_v49 }
 0x239   : > { %2035 = vmatmul.mubr.bf16.gmra.mxu0 %v5493_v11 }
 0x23a   : > { %4120 = vmatprep.mubr.bf16.mxu0 %v5090_v36 }
 0x23f   : > { %v3524_v26 = vpop.f32.mrf.mxu1  ;;  %2430 = vmatmul.mubr.bf16.vlgmr.msra.gmra.mxu1 %v5118_v1 }
 0x240   : > { %4208 = vmatpush3.bf16.msra.mxu1 %v5250_v38  ;;  %2437 = vmatprep.mubr.bf16.mxu1 %v5076_v28 }
 0x241   : > { %v4026_v50 = vpop.f32.mrf.mxu0  ;;  %4121 = vmatmul.mubr.bf16.vlgmr.msra.gmra.mxu0 %v5130_v9  ;;  %v3525_v12 = vpop.f32.mrf.mxu1  ;;  %4201 = vmatprep.subr.bf16.mxu1 %v5394_v15 }
 0x242   : > { %v3526_v45 = vadd.f32 %v3525_v12, %v3524_v26  ;;  %4124 = vmatprep.mubr.bf16.mxu0 %v5134_v10 }
 0x243   : > { %v1611_v49 = vpop.f32.mrf.mxu0  ;;  %v3527_v7 = vpop.f32.mrf.mxu1 }
 0x244   : > { %v5545_v58 = vadd.f32 %v3526_v45, %v1611_v49  ;;  %4209 = vmatpush3.bf16.msra.mxu1 %v5394_v15 }
 0x245   : > { %v4027_v36 = vpop.f32.mrf.mxu0  ;;  %v3528_v1 = vpop.f32.mrf.mxu1  ;;  %4202 = vmatprep.subr.bf16.mxu1 %v5406_v25 }
 0x246   : > { %v3529_v28 = vadd.f32 %v3528_v1, %v3527_v7 }
 0x247   : > { %v1614_v38 = vpop.f32.mrf.mxu0  ;;  %v3530_v41 = vpop.f32.mrf.mxu1  ;;  %2438 = vmatmul.mubr.bf16.gmra.mxu1 %v5169_v60 }
 0x248   : > { %v5550_v9 = vadd.f32 %v3529_v28, %v1614_v38  ;;  %2445 = vmatprep.mubr.bf16.mxu1 %v5060_v16  ;;  %4210 = vmatpush3.bf16.msra.mxu1 %v5406_v25 }
 0x249   : > { %v4030_v10 = vpop.f32.mrf.mxu0  ;;  %4125 = vmatmul.mubr.bf16.gmra.mxu0 %v5181_v2  ;;  %v3531_v35 = vpop.f32.mrf.mxu1  ;;  %4203 = vmatprep.subr.bf16.mxu1 %v5417_v56 }
 0x24a   : > { %v3532_v15 = vadd.f32 %v3531_v35, %v3530_v41  ;;  %4128 = vmatprep.mubr.bf16.mxu0 %v5185_v3 }
 0x24b   : > { %v1627_v26 = vpop.f32.mrf.mxu0  ;;  %v3533_v12 = vpop.f32.mrf.mxu1 }
 0x24c   : > { %v5557_v45 = vadd.f32 %v4026_v50, %v3532_v15  ;;  %4211 = vmatpush3.bf16.msra.mxu1 %v5417_v56 }
 0x24d   : > { %v4031_v60 = vpop.f32.mrf.mxu0  ;;  %v3534_v49 = vpop.f32.mrf.mxu1  ;;  %4204 = vmatprep.subr.bf16.mxu1 %v5426_v4 }
 0x24e   : > { %v3535_v16 = vadd.f32 %v3534_v49, %v3533_v12 }
 0x24f   : > { %v1630_v25 = vpop.f32.mrf.mxu0  ;;  %v3536_v7 = vpop.f32.mrf.mxu1  ;;  %2446 = vmatmul.mubr.bf16.gmra.mxu1 %v5212_v57 }
 0x250   : > { %v5562_v2 = vadd.f32 %v4027_v36, %v3535_v16  ;;  %2453 = vmatprep.mubr.bf16.mxu1 %v5125_v6  ;;  %4212 = vmatpush3.bf16.msra.mxu1 %v5426_v4 }
 0x251   : > { %v4034_v3 = vpop.f32.mrf.mxu0  ;;  %4129 = vmatmul.mubr.bf16.gmra.mxu0 %v5221_v8  ;;  %v3537_v50 = vpop.f32.mrf.mxu1  ;;  %4205 = vmatprep.subr.bf16.mxu1 %v5437_v30 }
 0x252   : > { %v3538_v56 = vadd.f32 %v3537_v50, %v3536_v7  ;;  %4132 = vmatprep.mubr.bf16.mxu0 %v5225_v13 }
 0x253   : > { %v1643_v1 = vpop.f32.mrf.mxu0  ;;  %v3539_v28 = vpop.f32.mrf.mxu1 }
 0x254   : > { %v5569_v38 = vadd.f32 %v3538_v56, %v1627_v26  ;;  %4213 = vmatpush3.bf16.msra.mxu1 %v5437_v30 }
 0x255   : > { %v4035_v57 = vpop.f32.mrf.mxu0  ;;  %v3540_v36 = vpop.f32.mrf.mxu1  ;;  %4206 = vmatprep.subr.bf16.mxu1 %v5446_v39 }
 0x256   : > { %v3541_v6 = vadd.f32 %v3540_v36, %v3539_v28 }
 0x257   : > { %v5573_v4 = vpop.f32.mrf.mxu0  ;;  %v3542_v8 = vpop.f32.mrf.mxu1  ;;  %2454 = vmatmul.mubr.bf16.gmra.mxu1 %v5254_v17 }
 0x258   : > { %v5576_v41 = vadd.f32 %v3541_v6, %v1630_v25  ;;  %2461 = vmatprep.mubr.bf16.mxu1 %v5113_v59  ;;  %4214 = vmatpush3.bf16.msra.mxu1 %v5446_v39 }
 0x259   : > { %v5580_v13 = vpop.f32.mrf.mxu0  ;;  %4133 = vmatmul.mubr.bf16.gmra.mxu0 %v5263_v47  ;;  %v3543_v30 = vpop.f32.mrf.mxu1  ;;  %4207 = vmatprep.subr.bf16.mxu1 %v5457_v24 }
 0x25a   : > { %v3544_v35 = vadd.f32 %v3543_v30, %v3542_v8  ;;  %4136 = vmatprep.mubr.bf16.mxu0 %v5267_v52 }
 0x25b   : > { %v1659_v15 = vpop.f32.mrf.mxu0  ;;  %v3545_v26 = vpop.f32.mrf.mxu1 }
 0x25c   : > { %v5585_v12 = vadd.f32 %v4030_v10, %v3544_v35  ;;  %4215 = vmatpush3.bf16.msra.mxu1 %v5457_v24 }
 0x25d   : > { %v5588_v17 = vpop.f32.mrf.mxu0  ;;  %v3546_v59 = vpop.f32.mrf.mxu1 }
 0x25e   : > { %v3547_v39 = vadd.f32 %v3546_v59, %v3545_v26 }
 0x25f   : > { %v5590_v49 = vpop.f32.mrf.mxu0  ;;  %v3548_v16 = vpop.f32.mrf.mxu1  ;;  %2462 = vmatmul.mubr.bf16.gmra.mxu1 %v5295_v32 }
 0x260   : > { %v5593_v47 = vadd.f32 %v4031_v60, %v3547_v39  ;;  %2469 = vmatprep.mubr.bf16.mxu1 %v5176_v63 }
 0x261   : > { %v5596_v52 = vpop.f32.mrf.mxu0  ;;  %4137 = vmatmul.mubr.bf16.gmra.mxu0 %v5304_v42  ;;  %v3549_v10 = vpop.f32.mrf.mxu1 }
 0x262   : > { %v3550_v25 = vadd.f32 %v3549_v10, %v3548_v16  ;;  %4140 = vmatprep.mubr.bf16.mxu0 %v5308_v46 }
 0x263   : > { %v5600_v24 = vpop.f32.mrf.mxu0  ;;  %v3551_v7 = vpop.f32.mrf.mxu1 }
 0x264   : > { %v5602_v50 = vadd.f32 %v3550_v25, %v1643_v1 }
 0x265   : > { %v5604_v56 = vpop.f32.mrf.mxu0  ;;  %v3552_v32 = vpop.f32.mrf.mxu1 }
 0x266   : > { %v5606_v60 = vadd.f32 %v3552_v32, %v3551_v7 }
 0x267   : > { %v5608_v28 = vpop.f32.mrf.mxu0  ;;  %v3554_v63 = vpop.f32.mrf.mxu1  ;;  %2470 = vmatmul.mubr.bf16.gmra.mxu1 %v5334_v21 }
 0x268   : > { %2477 = vmatprep.mubr.bf16.mxu1 %v5162_v51 }
 0x269   : > { %v5612_v42 = vpop.f32.mrf.mxu0  ;;  %4141 = vmatmul.mubr.bf16.gmra.mxu0 %v5346_v14  ;;  %v3555_v46 = vpop.f32.mrf.mxu1 }
 0x26a   : > { %v3556_v36 = vadd.f32 %v3555_v46, %v3554_v63 }
 0x26b   : > { %v5615_v1 = vpop.f32.mrf.mxu0  ;;  %v3557_v6 = vpop.f32.mrf.mxu1 }
 0x26c   : > { %v5617_v8 = vadd.f32 %v4034_v3, %v3556_v36  ;;  %v4405_v36 = vld [vmem:[#allocation11 + $0x38] sm:$0xff]  }
 0x26d   : > { %v5619_v30 = vpop.f32.mrf.mxu0  ;;  %v3558_v35 = vpop.f32.mrf.mxu1  ;;  %4152 = vmatprep.subr.bf16.mxu0 %v4405_v36 }
 0x26e   : > { %v3559_v26 = vadd.f32 %v3558_v35, %v3557_v6  ;;  %4153 = vmatpush3.bf16.msra.mxu0 %v4405_v36 }
 0x26f   : > { %v5621_v59 = vpop.f32.mrf.mxu0  ;;  %v3560_v21 = vpop.f32.mrf.mxu1  ;;  %2478 = vmatmul.mubr.bf16.gmra.mxu1 %v5368_v48 }
 0x270   : > { %v5624_v51 = vadd.f32 %v4035_v57, %v3559_v26  ;;  %2485 = vmatprep.mubr.bf16.mxu1 %v5216_v0 }
 0x271   : > { %v5627_v14 = vpop.f32.mrf.mxu0  ;;  %v3561_v39 = vpop.f32.mrf.mxu1 }
 0x272   : > { %v3562_v16 = vadd.f32 %v3561_v39, %v3560_v21 }
 0x273   : > { %v5629_v10 = vpop.f32.mrf.mxu0  ;;  %v3563_v3 = vpop.f32.mrf.mxu1 }
 0x274   : > { %v5631_v25 = vadd.f32 %v3562_v16, %v1659_v15  ;;  %v4406_v16 = vld [vmem:[#allocation11 + $0x30] sm:$0xff]  }
 0x275   : > { %v5633_v7 = vpop.f32.mrf.mxu0  ;;  %v3564_v32 = vpop.f32.mrf.mxu1  ;;  %4154 = vmatprep.subr.bf16.mxu0 %v4406_v16 }
 0x276   : > { %v5635_v63 = vadd.f32 %v3564_v32, %v3563_v3  ;;  %4155 = vmatpush3.bf16.msra.mxu0 %v4406_v16 }
 0x277   : > { %v5637_v46 = vpop.f32.mrf.mxu0  ;;  %v3566_v48 = vpop.f32.mrf.mxu1  ;;  %2486 = vmatmul.mubr.bf16.gmra.mxu1 %v5389_v18 }
 0x278   : > { %2493 = vmatprep.mubr.bf16.mxu1 %v5205_v37 }
 0x279   : > { %v5641_v0 = vpop.f32.mrf.mxu0  ;;  %v3567_v57 = vpop.f32.mrf.mxu1 }
 0x27a   : > { %6190 = vst [vmem:[#allocation29_spill] sm:$0xff] %v5641_v0  ;;  %v3568_v6 = vadd.f32 %v3567_v57, %v3566_v48  ;;  %v4407_v57 = vld [vmem:[#allocation11 + $0x28] sm:$0xff]  }
 0x27b   : > { %v5643_v35 = vpop.f32.mrf.mxu0  ;;  %v3569_v15 = vpop.f32.mrf.mxu1  ;;  %4156 = vmatprep.subr.bf16.mxu0 %v4407_v57 }
 0x27c   : > { %v5646_v26 = vadd.f32 %v5580_v13, %v3568_v6  ;;  %4157 = vmatpush3.bf16.msra.mxu0 %v4407_v57 }
 0x27d   : > { %v5648_v21 = vpop.f32.mrf.mxu0  ;;  %v3570_v39 = vpop.f32.mrf.mxu1 }
 0x27e   : > { %6191 = vst [vmem:[#allocation30_spill] sm:$0xff] %v5648_v21  ;;  %v3571_v18 = vadd.f32 %v3570_v39, %v3569_v15 }
 0x27f   : > { %v5650_v3 = vpop.f32.mrf.mxu0  ;;  %v3572_v37 = vpop.f32.mrf.mxu1  ;;  %2494 = vmatmul.mubr.bf16.gmra.mxu1 %v5410_v19 }
 0x280   : > { %6192 = vst [vmem:[#allocation31_spill] sm:$0xff] %v5650_v3  ;;  %v5654_v32 = vadd.f32 %v5588_v17, %v3571_v18  ;;  %2501 = vmatprep.mubr.bf16.mxu1 %v5258_v31  ;;  %v4408_v3 = vld [vmem:[#allocation11 + $0x20] sm:$0xff]  }
 0x281   : > { %v3660_v13 = vpop.f32.mrf.mxu0  ;;  %v3573_v48 = vpop.f32.mrf.mxu1  ;;  %4158 = vmatprep.subr.bf16.mxu0 %v4408_v3 }
 0x282   : > { %v3574_v36 = vadd.f32 %v3573_v48, %v3572_v37  ;;  %4159 = vmatpush3.bf16.msra.mxu0 %v4408_v3  ;;  %v4409_v48 = vld [vmem:[#allocation11 + $0x18] sm:$0xff]  }
 0x283   : > { %v3661_v6 = vpop.f32.mrf.mxu0  ;;  %v3575_v21 = vpop.f32.mrf.mxu1  ;;  %4160 = vmatprep.subr.bf16.mxu0 %v4409_v48 }
 0x284   : > { %v5658_v15 = vadd.f32 %v3574_v36, %v5600_v24  ;;  %v3662_v39 = vadd.f32 %v3661_v6, %v3660_v13 }
 0x285   : > { %v3663_v19 = vpop.f32.mrf.mxu0  ;;  %v3576_v0 = vpop.f32.mrf.mxu1 }
 0x286   : > { %v5660_v17 = vadd.f32 %v3576_v0, %v3575_v21  ;;  %v5663_v31 = vadd.f32 %v3662_v39, %v5545_v58  ;;  %4161 = vmatpush3.bf16.msra.mxu0 %v4409_v48 }
 0x287   : > { %v3664_v16 = vpop.f32.mrf.mxu0  ;;  %v3578_v18 = vpop.f32.mrf.mxu1  ;;  %2502 = vmatmul.mubr.bf16.gmra.mxu1 %v5430_v22 }
 0x288   : > { %v3665_v37 = vadd.f32 %v3664_v16, %v3663_v19  ;;  %2509 = vmatprep.mubr.bf16.mxu1 %v5245_v27  ;;  %v4410_v19 = vld [vmem:[#allocation11 + $0x10] sm:$0xff]  }
 0x289   : > { %v3666_v24 = vpop.f32.mrf.mxu0  ;;  %v3579_v13 = vpop.f32.mrf.mxu1  ;;  %4162 = vmatprep.subr.bf16.mxu0 %v4410_v19 }
 0x28a   : > { %v3580_v57 = vadd.f32 %v3579_v13, %v3578_v18  ;;  %v5668_v36 = vadd.f32 %v3665_v37, %v5550_v9  ;;  %4163 = vmatpush3.bf16.msra.mxu0 %v4410_v19  ;;  %v4411_v13 = vld [vmem:[#allocation11 + $0x8] sm:$0xff]  }
 0x28b   : > { %v3667_v0 = vpop.f32.mrf.mxu0  ;;  %v3581_v21 = vpop.f32.mrf.mxu1  ;;  %4164 = vmatprep.subr.bf16.mxu0 %v4411_v13 }
 0x28c   : > { %v5671_v58 = vadd.f32 %v5596_v52, %v3580_v57  ;;  %v3668_v6 = vadd.f32 %v3667_v0, %v3666_v24 }
 0x28d   : > { %v3669_v22 = vpop.f32.mrf.mxu0  ;;  %v3582_v39 = vpop.f32.mrf.mxu1 }
 0x28e   : > { %v3583_v27 = vadd.f32 %v3582_v39, %v3581_v21  ;;  %v5674_v3 = vadd.f32 %v3668_v6, %v5557_v45  ;;  %4165 = vmatpush3.bf16.msra.mxu0 %v4411_v13 }
 0x28f   : > { %v3670_v16 = vpop.f32.mrf.mxu0  ;;  %v3584_v18 = vpop.f32.mrf.mxu1  ;;  %2510 = vmatmul.mubr.bf16.gmra.mxu1 %v5450_v40 }
 0x290   : > { %v5678_v9 = vadd.f32 %v5604_v56, %v3583_v27  ;;  %v3671_v37 = vadd.f32 %v3670_v16, %v3669_v22  ;;  %2517 = vmatprep.mubr.bf16.mxu1 %v5299_v55  ;;  %v4412_v22 = vld [vmem:[#allocation11] sm:$0xff]  }
 0x291   : > { %v3672_v52 = vpop.f32.mrf.mxu0  ;;  %v3585_v24 = vpop.f32.mrf.mxu1  ;;  %4166 = vmatprep.subr.bf16.mxu0 %v4412_v22 }
 0x292   : > { %v3586_v48 = vadd.f32 %v3585_v24, %v3584_v18  ;;  %v5682_v57 = vadd.f32 %v3671_v37, %v5562_v2  ;;  %4167 = vmatpush3.bf16.msra.mxu0 %v4412_v22 }
 0x293   : > { %v3673_v45 = vpop.f32.mrf.mxu0  ;;  %v3587_v0 = vpop.f32.mrf.mxu1 }
 0x294   : > { %v5685_v40 = vadd.f32 %v3586_v48, %v5615_v1  ;;  %v3674_v21 = vadd.f32 %v3673_v45, %v3672_v52 }
 0x295   : > { %v3675_v56 = vpop.f32.mrf.mxu0  ;;  %v3588_v6 = vpop.f32.mrf.mxu1 }
 0x296   : > { %v5687_v55 = vadd.f32 %v3588_v6, %v3587_v0  ;;  %v5690_v39 = vadd.f32 %v3674_v21, %v5569_v38 }
 0x297   : > { %v3676_v19 = vpop.f32.mrf.mxu0  ;;  %v3590_v27 = vpop.f32.mrf.mxu1  ;;  %2518 = vmatmul.mubr.bf16.gmra.mxu1 %v5468_v44 }
 0x298   : > { %v3677_v2 = vadd.f32 %v3676_v19, %v3675_v56  ;;  %2525 = vmatprep.mubr.bf16.mxu1 %v5288_v43 }
 0x299   : > { %v3678_v1 = vpop.f32.mrf.mxu0  ;;  %v3591_v16 = vpop.f32.mrf.mxu1 }
 0x29a   : > { %v3592_v18 = vadd.f32 %v3591_v16, %v3590_v27  ;;  %v5695_v37 = vadd.f32 %v3677_v2, %v5576_v41 }
 0x29b   : > { %v3679_v52 = vpop.f32.mrf.mxu0  ;;  %v3593_v24 = vpop.f32.mrf.mxu1 }
 0x29c   : > { %v5698_v38 = vadd.f32 %v5612_v42, %v3592_v18  ;;  %v3680_v13 = vadd.f32 %v3679_v52, %v3678_v1 }
 0x29d   : > { %v3681_v48 = vpop.f32.mrf.mxu0  ;;  %v3594_v45 = vpop.f32.mrf.mxu1 }
 0x29e   : > { %v3595_v44 = vadd.f32 %v3594_v45, %v3593_v24  ;;  %v5701_v0 = vadd.f32 %v3680_v13, %v5585_v12 }
 0x29f   : > { %v3682_v43 = vpop.f32.mrf.mxu0  ;;  %v3596_v21 = vpop.f32.mrf.mxu1  ;;  %2526 = vmatmul.mubr.bf16.gmra.mxu1 %v5481_v62 }
 0x2a0   : > { %v5705_v56 = vadd.f32 %v5619_v30, %v3595_v44  ;;  %v3683_v41 = vadd.f32 %v3682_v43, %v3681_v48  ;;  %2533 = vmatprep.mubr.bf16.mxu1 %v5342_v29 }
 0x2a1   : > { %v3684_v6 = vpop.f32.mrf.mxu0  ;;  %v3597_v42 = vpop.f32.mrf.mxu1 }
 0x2a2   : > { %v3598_v22 = vadd.f32 %v3597_v42, %v3596_v21  ;;  %v5709_v19 = vadd.f32 %v3683_v41, %v5593_v47  ;;  %v1647_v47 = vadd.f32 %v5606_v60, %v5573_v4 }
 0x2a3   : > { %v3685_v27 = vpop.f32.mrf.mxu0  ;;  %v3599_v2 = vpop.f32.mrf.mxu1 }
 0x2a4   : > { %v5712_v12 = vadd.f32 %v3598_v22, %v5629_v10  ;;  %v3686_v1 = vadd.f32 %v3685_v27, %v3684_v6 }
 0x2a5   : > { %v3687_v16 = vpop.f32.mrf.mxu0  ;;  %v3600_v62 = vpop.f32.mrf.mxu1 }
 0x2a6   : > { %v5714_v18 = vadd.f32 %v3600_v62, %v3599_v2  ;;  %v5717_v30 = vadd.f32 %v3686_v1, %v5602_v50 }
 0x2a7   : > { %v3688_v29 = vpop.f32.mrf.mxu0  ;;  %v3602_v52 = vpop.f32.mrf.mxu1  ;;  %2534 = vmatmul.mubr.bf16.gmra.mxu1 %v5493_v11 }
 0x2a8   : > { %v3689_v24 = vadd.f32 %v3688_v29, %v3687_v16  ;;  %2541 = vmatprep.mubr.bf16.mxu1 %v5328_v53 }
 0x2a9   : > { %v3690_v10 = vpop.f32.mrf.mxu0  ;;  %v3603_v13 = vpop.f32.mrf.mxu1 }
 0x2aa   : > { %v3604_v48 = vadd.f32 %v3603_v13, %v3602_v52  ;;  %v5723_v45 = vadd.f32 %v3689_v24, %v1647_v47 }
 0x2ab   : > { %v3691_v44 = vpop.f32.mrf.mxu0  ;;  %v3605_v43 = vpop.f32.mrf.mxu1 }
 0x2ac   : > { %v5726_v50 = vadd.f32 %v5627_v14, %v3604_v48  ;;  %v3692_v21 = vadd.f32 %v3691_v44, %v3690_v10  ;;  %v1663_v10 = vadd.f32 %v5635_v63, %v5590_v49 }
 0x2ad   : > { %v3693_v41 = vpop.f32.mrf.mxu0  ;;  %v3606_v6 = vpop.f32.mrf.mxu1 }
 0x2ae   : > { %v3607_v11 = vadd.f32 %v3606_v6, %v3605_v43  ;;  %v5729_v42 = vadd.f32 %v3692_v21, %v5617_v8 }
 0x2af   : > { %v3694_v4 = vpop.f32.mrf.mxu0  ;;  %v3608_v60 = vpop.f32.mrf.mxu1  ;;  %2542 = vmatmul.mubr.bf16.gmra.mxu1 %v5364_v5 }
 0x2b0   : > { %v5733_v53 = vadd.f32 %v5633_v7, %v3607_v11  ;;  %v3695_v22 = vadd.f32 %v3694_v4, %v3693_v41  ;;  %2549 = vmatprep.mubr.bf16.mxu1 %v5049_v61 }
 0x2b1   : > { %v3696_v27 = vpop.f32.mrf.mxu0  ;;  %v3609_v14 = vpop.f32.mrf.mxu1 }
 0x2b2   : > { %v3610_v2 = vadd.f32 %v3609_v14, %v3608_v60  ;;  %v5737_v1 = vadd.f32 %v3695_v22, %v5624_v51  ;;  %v6193_v51 = vsel %vm5071_vm5, 0, %v5148_v34  ;;  %v6194_v60 = vld [vmem:[#allocation28_spill] sm:$0xff] }
 0x2b3   : > { %v3697_v16 = vpop.f32.mrf.mxu0  ;;  %v3611_v62 = vpop.f32.mrf.mxu1 }
 0x2b4   : > { %v5740_v8 = vadd.f32 %v3610_v2, %v5643_v35  ;;  %v3698_v29 = vadd.f32 %v3697_v16, %v3696_v27 }
 0x2b5   : > { %v3699_v52 = vpop.f32.mrf.mxu0  ;;  %v3612_v5 = vpop.f32.mrf.mxu1 }
 0x2b6   : > { %v5742_v47 = vadd.f32 %v3612_v5, %v3611_v62  ;;  %v5745_v7 = vadd.f32 %v3698_v29, %v5631_v25 }
 0x2b7   : > { %v3700_v61 = vpop.f32.mrf.mxu0  ;;  %v3614_v24 = vpop.f32.mrf.mxu1  ;;  %2550 = vmatmul.mubr.bf16.gmra.mxu1 %v6193_v51 }
 0x2b8   : > { %v3701_v35 = vadd.f32 %v3700_v61, %v3699_v52  ;;  %4144 = vmatprep.mubr.bf16.mxu1 %v5338_v33 }
 0x2b9   : > { %v3702_v13 = vpop.f32.mrf.mxu0  ;;  %v3615_v48 = vpop.f32.mrf.mxu1 }
 0x2ba   : > { %v5754_v44 = vadd.f32 %v3615_v48, %v3614_v24  ;;  %v5756_v43 = vadd.f32 %v3701_v35, %v1663_v10 }
 0x2bb   : > { %v3703_v25 = vpop.f32.mrf.mxu0  ;;  %v3617_v21 = vpop.f32.mrf.mxu1 }
 0x2bc   : > { %v3704_v41 = vadd.f32 %v3703_v25, %v3702_v13 }
 0x2bd   : > { %v3705_v6 = vpop.f32.mrf.mxu0  ;;  %v3618_v23 = vpop.f32.mrf.mxu1 }
 0x2be   : > { %v5758_v11 = vadd.f32 %v3618_v23, %v3617_v21  ;;  %v1973_v34 = vadd.f32 %v3704_v41, %v5646_v26 }
 0x2bf   : > { %v3706_v4 = vpop.f32.mrf.mxu0  ;;  %v4074_v49 = vpop.f32.mrf.mxu1  ;;  %4145 = vmatmul.mubr.bf16.vlgmr.msra.gmra.mxu1 %v5372_v54 }
 0x2c0   : > { %v3707_v33 = vadd.f32 %v3706_v4, %v3705_v6  ;;  %v5763_v63 = vadd.f32 %v4074_v49, %v5674_v3  ;;  %4148 = vmatprep.mubr.bf16.mxu1 %v6194_v60 }
 0x2c1   : > { %v3708_v22 = vpop.f32.mrf.mxu0  ;;  %v2077_v27 = vpop.f32.mrf.mxu1 }
 0x2c2   : > { %v5767_v14 = vadd.f32 %v2077_v27, %v5663_v31  ;;  %v1976_v2 = vadd.f32 %v3707_v33, %v5654_v32  ;;  %v6195_v31 = vld [vmem:[#allocation27_spill] sm:$0xff]  ;;  %v1679_v32 = vadd.f32 %v5660_v17, %v5608_v28 }
 0x2c3   : > { %v3709_v16 = vpop.f32.mrf.mxu0  ;;  %v4075_v62 = vpop.f32.mrf.mxu1  ;;  %v6196_v51 = vsel %vm5065_vm4, %v6195_v31, 0 }
 0x2c4   : > { %v3710_v26 = vadd.f32 %v3709_v16, %v3708_v22  ;;  %v5771_v29 = vadd.f32 %v4075_v62, %v5682_v57 }
 0x2c5   : > { %v3711_v54 = vpop.f32.mrf.mxu0  ;;  %v2080_v52 = vpop.f32.mrf.mxu1 }
 0x2c6   : > { %v5774_v3 = vadd.f32 %v2080_v52, %v5668_v36  ;;  %v1981_v5 = vadd.f32 %v3710_v26, %v5658_v15 }
 0x2c7   : > { %v3712_v61 = vpop.f32.mrf.mxu0  ;;  %v4078_v24 = vpop.f32.mrf.mxu1  ;;  %4149 = vmatmul.mubr.bf16.gmra.mxu1 %v6196_v51 }
 0x2c8   : > { %v3713_v10 = vadd.f32 %v3712_v61, %v3711_v54  ;;  %v5784_v57 = vadd.f32 %v4078_v24, %v5701_v0 }
 0x2c9   : > { %v3714_v35 = vpop.f32.mrf.mxu0  ;;  %v2093_v13 = vpop.f32.mrf.mxu1 }
 0x2ca   : > { %v5787_v36 = vadd.f32 %v2093_v13, %v5690_v39  ;;  %v1984_v15 = vadd.f32 %v3713_v10, %v1679_v32 }
 0x2cb   : > { %v3715_v48 = vpop.f32.mrf.mxu0  ;;  %v4079_v25 = vpop.f32.mrf.mxu1 }
 0x2cc   : > { %v3716_v21 = vadd.f32 %v3715_v48, %v3714_v35  ;;  %v5790_v20 = vadd.f32 %v4079_v25, %v5709_v19 }
 0x2cd   : > { %v3717_v41 = vpop.f32.mrf.mxu0  ;;  %v2096_v6 = vpop.f32.mrf.mxu1 }
 0x2ce   : > { %v5793_v28 = vadd.f32 %v2096_v6, %v5695_v37  ;;  %v1989_v17 = vadd.f32 %v3716_v21, %v5671_v58 }
 0x2cf   : > { %v3718_v0 = vpop.f32.mrf.mxu0  ;;  %v4082_v23 = vpop.f32.mrf.mxu1 }
 0x2d0   : > { %v3719_v4 = vadd.f32 %v3718_v0, %v3717_v41  ;;  %v5797_v39 = vadd.f32 %v4082_v23, %v5729_v42 }
 0x2d1   : > { %v3720_v49 = vpop.f32.mrf.mxu0  ;;  %v2109_v33 = vpop.f32.mrf.mxu1 }
 0x2d2   : > { %v5800_v60 = vadd.f32 %v2109_v33, %v5717_v30  ;;  %v1992_v19 = vadd.f32 %v3719_v4, %v5678_v9  ;;  %v1695_v30 = vadd.f32 %v5687_v55, %v5621_v59 }
 0x2d3   : > { %v3721_v22 = vpop.f32.mrf.mxu0  ;;  %v4083_v27 = vpop.f32.mrf.mxu1 }
 0x2d4   : > { %v3722_v16 = vadd.f32 %v3721_v22, %v3720_v49  ;;  %v5804_v37 = vadd.f32 %v4083_v27, %v5737_v1 }
 0x2d5   : > { %v3723_v58 = vpop.f32.mrf.mxu0  ;;  %v2112_v62 = vpop.f32.mrf.mxu1 }
 0x2d6   : > { %v5807_v26 = vadd.f32 %v2112_v62, %v5723_v45  ;;  %v1997_v42 = vadd.f32 %v3722_v16, %v5685_v40  ;;  %v1711_v16 = vadd.f32 %v5714_v18, %v5637_v46 }
 0x2d7   : > { %v3724_v54 = vpop.f32.mrf.mxu0  ;;  %v4086_v52 = vpop.f32.mrf.mxu1 }
 0x2d8   : > { %v3725_v61 = vadd.f32 %v3724_v54, %v3723_v58  ;;  %v5812_v9 = vadd.f32 %v4086_v52, %v1973_v34 }
 0x2d9   : > { %v3726_v24 = vpop.f32.mrf.mxu0  ;;  %v2125_v31 = vpop.f32.mrf.mxu1 }
 0x2da   : > { %v5815_v1 = vadd.f32 %v2125_v31, %v5745_v7  ;;  %v2000_v51 = vadd.f32 %v3725_v61, %v1695_v30 }
 0x2db   : > { %v3727_v32 = vpop.f32.mrf.mxu0  ;;  %v4087_v10 = vpop.f32.mrf.mxu1 }
 0x2dc   : > { %v3728_v45 = vadd.f32 %v3727_v32, %v3726_v24  ;;  %v5817_v35 = vadd.f32 %v4087_v10, %v1976_v2 }
 0x2dd   : > { %v3729_v40 = vpop.f32.mrf.mxu0  ;;  %v2128_v13 = vpop.f32.mrf.mxu1 }
 0x2de   : > { %v5820_v48 = vadd.f32 %v2128_v13, %v5756_v43  ;;  %v2005_v59 = vadd.f32 %v3728_v45, %v5698_v38 }
 0x2df   : > { %v3730_v55 = vpop.f32.mrf.mxu0  ;;  %v4090_v34 = vpop.f32.mrf.mxu1 }
 0x2e0   : > { %v3731_v25 = vadd.f32 %v3730_v55, %v3729_v40  ;;  %v5823_v21 = vadd.f32 %v4090_v34, %v1989_v17 }
 0x2e1   : > { %v3732_v7 = vpop.f32.mrf.mxu0  ;;  %v2141_v41 = vpop.f32.mrf.mxu1 }
 0x2e2   : > { %v5825_v6 = vadd.f32 %v2141_v41, %v1981_v5  ;;  %v2008_v0 = vadd.f32 %v3731_v25, %v5705_v56 }
 0x2e3   : > { %v3733_v2 = vpop.f32.mrf.mxu0  ;;  %v4091_v23 = vpop.f32.mrf.mxu1 }
 0x2e4   : > { %v3734_v4 = vadd.f32 %v3733_v2, %v3732_v7  ;;  %v5828_v49 = vadd.f32 %v4091_v23, %v1992_v19 }
 0x2e5   : > { %v3735_v43 = vpop.f32.mrf.mxu0  ;;  %v2144_v33 = vpop.f32.mrf.mxu1 }
 0x2e6   : > { %v5830_v22 = vadd.f32 %v2144_v33, %v1984_v15  ;;  %v2013_v38 = vadd.f32 %v3734_v4, %v5712_v12  ;;  %v6197_v4 = vld [vmem:[#allocation31_spill] sm:$0xff] }
 0x2e7   : > { %v3736_v27 = vpop.f32.mrf.mxu0  ;;  %v4094_v17 = vpop.f32.mrf.mxu1 }
 0x2e8   : > { %v3737_v5 = vadd.f32 %v3736_v27, %v3735_v43  ;;  %v5835_v58 = vadd.f32 %v4094_v17, %v2005_v59  ;;  %v1727_v43 = vadd.f32 %v5742_v47, %v6197_v4  ;;  %v6199_v47 = vld [vmem:[#allocation30_spill] sm:$0xff] }
 0x2e9   : > { %v3738_v56 = vpop.f32.mrf.mxu0  ;;  %v2157_v62 = vpop.f32.mrf.mxu1 }
 0x2ea   : > { %v5837_v54 = vadd.f32 %v2157_v62, %v1997_v42  ;;  %v2016_v19 = vadd.f32 %v3737_v5, %v1711_v16 }
 0x2eb   : > { %v3739_v52 = vpop.f32.mrf.mxu0  ;;  %v4095_v30 = vpop.f32.mrf.mxu1 }
 0x2ec   : > { %v3740_v61 = vadd.f32 %v3739_v52, %v3738_v56  ;;  %v5839_v15 = vadd.f32 %v4095_v30, %v2008_v0  ;;  %v6198_v56 = vld [vmem:[#allocation29_spill] sm:$0xff] }
 0x2ed   : > { %v3741_v24 = vpop.f32.mrf.mxu0  ;;  %v2160_v12 = vpop.f32.mrf.mxu1  ;;  %v1732_v62 = vadd.f32 %v6198_v56, %v5754_v44 }
 0x2ee   : > { %v5841_v31 = vadd.f32 %v2160_v12, %v2000_v51  ;;  %v2021_v32 = vadd.f32 %v3740_v61, %v5726_v50 }
 0x2ef   : > { %v3742_v46 = vpop.f32.mrf.mxu0  ;;  %v4098_v18 = vpop.f32.mrf.mxu1 }
 0x2f0   : > { %v3743_v10 = vadd.f32 %v3742_v46, %v3741_v24  ;;  %v5844_v45 = vadd.f32 %v4098_v18, %v2021_v32  ;;  %v1735_v32 = vadd.f32 %v6199_v47, %v5758_v11  ;;  %v5872_v11 = vld [vmem:[%s6103_s6] ss:$0 sm:$0xff] }
 0x2f1   : > { %v3744_v40 = vpop.f32.mrf.mxu0  ;;  %v2173_v42 = vpop.f32.mrf.mxu1 }
 0x2f2   : > { %v5846_v13 = vadd.f32 %v2173_v42, %v2013_v38  ;;  %v2024_v59 = vadd.f32 %v3743_v10, %v5733_v53 }
 0x2f3   : > { %v3745_v55 = vpop.f32.mrf.mxu0  ;;  %v4099_v34 = vpop.f32.mrf.mxu1 }
 0x2f4   : > { %v3746_v25 = vadd.f32 %v3745_v55, %v3744_v40  ;;  %v5849_v7 = vadd.f32 %v4099_v34, %v2024_v59 }
 0x2f5   : > { %v3747_v51 = vpop.f32.mrf.mxu0  ;;  %v2176_v41 = vpop.f32.mrf.mxu1 }
 0x2f6   : > { %v5851_v0 = vadd.f32 %v2176_v41, %v2016_v19  ;;  %v2029_v50 = vadd.f32 %v3746_v25, %v5740_v8 }
 0x2f7   : > { %v3748_v2 = vpop.f32.mrf.mxu0  ;;  %v4102_v23 = vpop.f32.mrf.mxu1 }
 0x2f8   : > { %v3749_v33 = vadd.f32 %v3748_v2, %v3747_v51 }
 0x2f9   : > { %v3750_v38 = vpop.f32.mrf.mxu0  ;;  %v2189_v27 = vpop.f32.mrf.mxu1 }
 0x2fa   : > { %v5856_v53 = vadd.f32 %v2189_v27, %v2029_v50  ;;  %v2032_v17 = vadd.f32 %v3749_v33, %v1727_v43 }
 0x2fb   : > { %v3751_v16 = vpop.f32.mrf.mxu0  ;;  %v4103_v5 = vpop.f32.mrf.mxu1 }
 0x2fc   : > { %v3752_v19 = vadd.f32 %v3751_v16, %v3750_v38 }
 0x2fd   : > { %v3753_v52 = vpop.f32.mrf.mxu0  ;;  %v2192_v30 = vpop.f32.mrf.mxu1 }
 0x2fe   : > { %v2037_v8 = vadd.f32 %v3752_v19, %v1732_v62  ;;  %v5860_v61 = vadd.f32 %v2192_v30, %v2032_v17 }
 0x2ff   : > { %v3754_v24 = vpop.f32.mrf.mxu0  ;;  %v3796_v12 = vpop.f32.mrf.mxu1 }
 0x300   : > { %v3755_v46 = vadd.f32 %v3754_v24, %v3753_v52  ;;  %v5864_v18 = vadd.f32 %v4102_v23, %v2037_v8 }
 0x301   : > { %v4122_v10 = vpop.f32.mrf.mxu0  ;;  %v3797_v40 = vpop.f32.mrf.mxu1 }
 0x302   : > { %v2040_v42 = vadd.f32 %v3755_v46, %v1735_v32  ;;  %v3798_v59 = vadd.f32 %v3797_v40, %v3796_v12 }
 0x303   : > { %v2592_v55 = vpop.f32.mrf.mxu0  ;;  %v3799_v44 = vpop.f32.mrf.mxu1 }
 0x304   : > { %v2593_v34 = vadd.f32 %v3798_v59, %v2592_v55  ;;  %v5866_v25 = vadd.f32 %v4103_v5, %v2040_v42 }
 0x305   : > { %v4123_v51 = vpop.f32.mrf.mxu0  ;;  %v3800_v41 = vpop.f32.mrf.mxu1 }
 0x306   : > { %v2719_v50 = vadd.f32 %v2593_v34, %v5767_v14  ;;  %v3801_v2 = vadd.f32 %v3800_v41, %v3799_v44 }
 0x307   : > { %v2595_v23 = vpop.f32.mrf.mxu0  ;;  %v3802_v4 = vpop.f32.mrf.mxu1 }
 0x308   : > { %v2596_v43 = vadd.f32 %v3801_v2, %v2595_v23  ;;  %v2758_v38 = vadd.f32 %v5872_v11, %v2719_v50 }
 0x309   : > { %v3803_v33 = vpop.f32.mrf.mxu1  ;;  %v4126_v16 = vpop.f32.mrf.mxu0 }
 0x30a   : > { %v2720_v27 = vadd.f32 %v2596_v43, %v5774_v3  ;;  %v3804_v17 = vadd.f32 %v3803_v33, %v3802_v4  ;;  %v2790_v19 = vmax.f32 %v2758_v38, 0.0 }
 0x30b   : > { %v3805_v5 = vpop.f32.mrf.mxu1  ;;  %v2608_v24 = vpop.f32.mrf.mxu0 }
 0x30c   : > { %v2759_v56 = vadd.f32 %v5872_v11, %v2720_v27  ;;  %v2601_v14 = vadd.f32 %v4122_v10, %v3804_v17 }
 0x30d   : > { %v3806_v62 = vpop.f32.mrf.mxu1  ;;  %v4127_v59 = vpop.f32.mrf.mxu0 }
 0x30e   : > { %v2791_v52 = vmax.f32 %v2759_v56, 0.0  ;;  %v2721_v30 = vadd.f32 %v2601_v14, %v5763_v63  ;;  %v3807_v8 = vadd.f32 %v3806_v62, %v3805_v5 }
 0x30f   : > { %v3808_v12 = vpop.f32.mrf.mxu1 }
 0x310   : > { %v2604_v47 = vadd.f32 %v4123_v51, %v3807_v8  ;;  %v2822_v32 = vpack.c.bf16 %v2791_v52, %v2790_v19  ;;  %v2760_v40 = vadd.f32 %v5872_v11, %v2721_v30  ;;  %v2611_v51 = vpop.f32.mrf.mxu0 }
 0x311   : > { %v3809_v46 = vpop.f32.mrf.mxu1 }
 0x312   : > { %v2722_v3 = vadd.f32 %v2604_v47, %v5771_v29  ;;  %v3810_v42 = vadd.f32 %v3809_v46, %v3808_v12  ;;  %4168 = vmatprep.mubr.bf16.mxu0 %v2822_v32  ;;  %v2792_v41 = vmax.f32 %v2760_v40, 0.0  ;;  %v4130_v17 = vpop.f32.mrf.mxu0 }
 0x313   : > { %v3811_v55 = vpop.f32.mrf.mxu1 }
 0x314   : > { %v2761_v10 = vadd.f32 %v5872_v11, %v2722_v3  ;;  %v2609_v44 = vadd.f32 %v3810_v42, %v2608_v24  ;;  %v2624_v8 = vpop.f32.mrf.mxu0 }
 0x315   : > { %v3812_v34 = vpop.f32.mrf.mxu1 }
 0x316   : > { %v2793_v63 = vmax.f32 %v2761_v10, 0.0  ;;  %v2723_v50 = vadd.f32 %v2609_v44, %v5787_v36  ;;  %v3813_v2 = vadd.f32 %v3812_v34, %v3811_v55 }
 0x317   : > { %v3814_v23 = vpop.f32.mrf.mxu1 }
 0x318   : > { %v2823_v4 = vpack.c.bf16 %v2793_v63, %v2792_v41  ;;  %v2612_v43 = vadd.f32 %v3813_v2, %v2611_v51  ;;  %v2762_v27 = vadd.f32 %v5872_v11, %v2723_v50 }
 0x319   : > { %v3815_v33 = vpop.f32.mrf.mxu1 }
 0x31a   : > { %v2724_v29 = vadd.f32 %v2612_v43, %v5793_v28  ;;  %v3816_v38 = vadd.f32 %v3815_v33, %v3814_v23  ;;  %4169 = vmatmul.mubr.bf16.vlgmr.msra.gmra.mxu0 %v2823_v4  ;;  %v2794_v52 = vmax.f32 %v2762_v27, 0.0 }
 0x31b   : > { %v3817_v5 = vpop.f32.mrf.mxu1 }
 0x31c   : > { %v2617_v56 = vadd.f32 %v4126_v16, %v3816_v38  ;;  %v2763_v14 = vadd.f32 %v5872_v11, %v2724_v29  ;;  %v4131_v16 = vpop.f32.mrf.mxu0 }
 0x31d   : > { %v3818_v62 = vpop.f32.mrf.mxu1 }
 0x31e   : > { %v2725_v36 = vadd.f32 %v2617_v56, %v5784_v57  ;;  %v3819_v19 = vadd.f32 %v3818_v62, %v3817_v5  ;;  %v2795_v30 = vmax.f32 %v2763_v14, 0.0 }
 0x31f   : > { %v3820_v24 = vpop.f32.mrf.mxu1 }
 0x320   : > { %v2620_v12 = vadd.f32 %v4127_v59, %v3819_v19  ;;  %v2824_v47 = vpack.c.bf16 %v2795_v30, %v2794_v52  ;;  %v2764_v32 = vadd.f32 %v5872_v11, %v2725_v36  ;;  %v2627_v59 = vpop.f32.mrf.mxu0 }
 0x321   : > { %v3821_v28 = vpop.f32.mrf.mxu1 }
 0x322   : > { %v2726_v46 = vadd.f32 %v2620_v12, %v5790_v20  ;;  %v3822_v40 = vadd.f32 %v3821_v28, %v3820_v24  ;;  %4172 = vmatprep.mubr.bf16.mxu0 %v2824_v47  ;;  %v2796_v10 = vmax.f32 %v2764_v32, 0.0  ;;  %v4134_v43 = vpop.f32.mrf.mxu0 }
 0x323   : > { %v3823_v3 = vpop.f32.mrf.mxu1 }
 0x324   : > { %v2765_v42 = vadd.f32 %v5872_v11, %v2726_v46  ;;  %v2625_v55 = vadd.f32 %v3822_v40, %v2624_v8  ;;  %v2640_v62 = vpop.f32.mrf.mxu0 }
 0x325   : > { %v3824_v57 = vpop.f32.mrf.mxu1 }
 0x326   : > { %v2797_v44 = vmax.f32 %v2765_v42, 0.0  ;;  %v2727_v34 = vadd.f32 %v2625_v55, %v5800_v60  ;;  %v3825_v41 = vadd.f32 %v3824_v57, %v3823_v3 }
 0x327   : > { %v3826_v63 = vpop.f32.mrf.mxu1 }
 0x328   : > { %v2628_v50 = vadd.f32 %v3825_v41, %v2627_v59  ;;  %v2825_v2 = vpack.c.bf16 %v2797_v44, %v2796_v10  ;;  %v2766_v4 = vadd.f32 %v5872_v11, %v2727_v34 }
 0x329   : > { %v3827_v51 = vpop.f32.mrf.mxu1 }
 0x32a   : > { %v2728_v20 = vadd.f32 %v2628_v50, %v5807_v26  ;;  %v3828_v23 = vadd.f32 %v3827_v51, %v3826_v63  ;;  %4173 = vmatmul.mubr.bf16.gmra.mxu0 %v2825_v2  ;;  %v2798_v56 = vmax.f32 %v2766_v4, 0.0 }
 0x32b   : > { %v3829_v33 = vpop.f32.mrf.mxu1 }
 0x32c   : > { %v2633_v29 = vadd.f32 %v4130_v17, %v3828_v23  ;;  %v2767_v38 = vadd.f32 %v5872_v11, %v2728_v20  ;;  %v4135_v17 = vpop.f32.mrf.mxu0 }
 0x32d   : > { %v3830_v27 = vpop.f32.mrf.mxu1 }
 0x32e   : > { %v2729_v60 = vadd.f32 %v2633_v29, %v5797_v39  ;;  %v3831_v5 = vadd.f32 %v3830_v27, %v3829_v33  ;;  %v2799_v14 = vmax.f32 %v2767_v38, 0.0 }
 0x32f   : > { %v3832_v36 = vpop.f32.mrf.mxu1 }
 0x330   : > { %v2636_v19 = vadd.f32 %v4131_v16, %v3831_v5  ;;  %v2826_v52 = vpack.c.bf16 %v2799_v14, %v2798_v56  ;;  %v2768_v30 = vadd.f32 %v5872_v11, %v2729_v60  ;;  %v2643_v16 = vpop.f32.mrf.mxu0 }
 0x331   : > { %v3833_v26 = vpop.f32.mrf.mxu1 }
 0x332   : > { %v2730_v8 = vadd.f32 %v2636_v19, %v5804_v37  ;;  %v3834_v24 = vadd.f32 %v3833_v26, %v3832_v36  ;;  %4176 = vmatprep.mubr.bf16.mxu0 %v2826_v52  ;;  %v2800_v32 = vmax.f32 %v2768_v30, 0.0  ;;  %v4138_v41 = vpop.f32.mrf.mxu0 }
 0x333   : > { %v3835_v12 = vpop.f32.mrf.mxu1 }
 0x334   : > { %v2769_v47 = vadd.f32 %v5872_v11, %v2730_v8  ;;  %v2641_v28 = vadd.f32 %v3834_v24, %v2640_v62  ;;  %v2656_v4 = vpop.f32.mrf.mxu0 }
 0x335   : > { %v3836_v39 = vpop.f32.mrf.mxu1 }
 0x336   : > { %v2801_v46 = vmax.f32 %v2769_v47, 0.0  ;;  %v2731_v40 = vadd.f32 %v2641_v28, %v5815_v1  ;;  %v3837_v3 = vadd.f32 %v3836_v39, %v3835_v12 }
 0x337   : > { %v3838_v42 = vpop.f32.mrf.mxu1 }
 0x338   : > { %v2644_v55 = vadd.f32 %v3837_v3, %v2643_v16  ;;  %v2827_v57 = vpack.c.bf16 %v2801_v46, %v2800_v32  ;;  %v2770_v34 = vadd.f32 %v5872_v11, %v2731_v40 }
 0x339   : > { %v3839_v10 = vpop.f32.mrf.mxu1 }
 0x33a   : > { %v2732_v37 = vadd.f32 %v2644_v55, %v5820_v48  ;;  %v3840_v44 = vadd.f32 %v3839_v10, %v3838_v42  ;;  %4177 = vmatmul.mubr.bf16.gmra.mxu0 %v2827_v57  ;;  %v2802_v20 = vmax.f32 %v2770_v34, 0.0 }
 0x33b   : > { %v3841_v59 = vpop.f32.mrf.mxu1 }
 0x33c   : > { %v2649_v63 = vadd.f32 %v4134_v43, %v3840_v44  ;;  %v2771_v50 = vadd.f32 %v5872_v11, %v2732_v37  ;;  %v4139_v43 = vpop.f32.mrf.mxu0 }
 0x33d   : > { %v3842_v2 = vpop.f32.mrf.mxu1 }
 0x33e   : > { %v2733_v1 = vadd.f32 %v2649_v63, %v5812_v9  ;;  %v3843_v51 = vadd.f32 %v3842_v2, %v3841_v59  ;;  %v2803_v23 = vmax.f32 %v2771_v50, 0.0  ;;  %v2659_v30 = vpop.f32.mrf.mxu0 }
 0x33f   : > { %v3844_v33 = vpop.f32.mrf.mxu1 }
 0x340   : > { %v2652_v29 = vadd.f32 %v4135_v17, %v3843_v51  ;;  %v2828_v38 = vpack.c.bf16 %v2803_v23, %v2802_v20  ;;  %v2772_v27 = vadd.f32 %v5872_v11, %v2733_v1  ;;  %v4142_v39 = vpop.f32.mrf.mxu0 }
 0x341   : > { %v3845_v48 = vpop.f32.mrf.mxu1 }
 0x342   : > { %v2734_v60 = vadd.f32 %v2652_v29, %v5817_v35  ;;  %v3846_v5 = vadd.f32 %v3845_v48, %v3844_v33  ;;  %4180 = vmatprep.mubr.bf16.mxu0 %v2828_v38  ;;  %v2804_v36 = vmax.f32 %v2772_v27, 0.0  ;;  %v2672_v57 = vpop.f32.mrf.mxu0 }
 0x343   : > { %v3847_v56 = vpop.f32.mrf.mxu1 }
 0x344   : > { %v2773_v14 = vadd.f32 %v5872_v11, %v2734_v60  ;;  %v2657_v62 = vadd.f32 %v3846_v5, %v2656_v4 }
 0x345   : > { %v3848_v9 = vpop.f32.mrf.mxu1 }
 0x346   : > { %v2805_v19 = vmax.f32 %v2773_v14, 0.0  ;;  %v2735_v52 = vadd.f32 %v2657_v62, %v5825_v6  ;;  %v3849_v26 = vadd.f32 %v3848_v9, %v3847_v56 }
 0x347   : > { %v3850_v8 = vpop.f32.mrf.mxu1 }
 0x348   : > { %v2660_v24 = vadd.f32 %v3849_v26, %v2659_v30  ;;  %v2829_v17 = vpack.c.bf16 %v2805_v19, %v2804_v36  ;;  %v2774_v28 = vadd.f32 %v5872_v11, %v2735_v52 }
 0x349   : > { %v3851_v12 = vpop.f32.mrf.mxu1 }
 0x34a   : > { %v2736_v35 = vadd.f32 %v2660_v24, %v5830_v22  ;;  %v3852_v47 = vadd.f32 %v3851_v12, %v3850_v8  ;;  %4181 = vmatmul.mubr.bf16.gmra.mxu0 %v2829_v17  ;;  %v2806_v42 = vmax.f32 %v2774_v28, 0.0 }
 0x34b   : > { %v3853_v32 = vpop.f32.mrf.mxu1 }
 0x34c   : > { %v2665_v46 = vadd.f32 %v4138_v41, %v3852_v47  ;;  %v2775_v40 = vadd.f32 %v5872_v11, %v2736_v35  ;;  %v4143_v41 = vpop.f32.mrf.mxu0 }
 0x34d   : > { %v3854_v3 = vpop.f32.mrf.mxu1 }
 0x34e   : > { %v2737_v6 = vadd.f32 %v2665_v46, %v5823_v21  ;;  %v3855_v16 = vadd.f32 %v3854_v3, %v3853_v32  ;;  %v2807_v55 = vmax.f32 %v2775_v40, 0.0  ;;  %v2675_v33 = vpop.f32.mrf.mxu0 }
 0x34f   : > { %v3856_v10 = vpop.f32.mrf.mxu1 }
 0x350   : > { %v2668_v37 = vadd.f32 %v4139_v43, %v3855_v16  ;;  %v2830_v44 = vpack.c.bf16 %v2807_v55, %v2806_v42  ;;  %v2776_v34 = vadd.f32 %v5872_v11, %v2737_v6 }
 0x351   : > { %v3857_v22 = vpop.f32.mrf.mxu1 }
 0x352   : > { %v2738_v59 = vadd.f32 %v2668_v37, %v5828_v49  ;;  %v3858_v63 = vadd.f32 %v3857_v22, %v3856_v10  ;;  %4184 = vmatprep.mubr.bf16.mxu0 %v2830_v44  ;;  %v2808_v51 = vmax.f32 %v2776_v34, 0.0 }
 0x353   : > { %v3859_v50 = vpop.f32.mrf.mxu1 }
 0x354   : > { %v2777_v2 = vadd.f32 %v5872_v11, %v2738_v59  ;;  %v2673_v1 = vadd.f32 %v3858_v63, %v2672_v57 }
 0x355   : > { %v3860_v21 = vpop.f32.mrf.mxu1 }
 0x356   : > { %v2809_v20 = vmax.f32 %v2777_v2, 0.0  ;;  %v2739_v23 = vadd.f32 %v2673_v1, %v5837_v54  ;;  %v3861_v4 = vadd.f32 %v3860_v21, %v3859_v50 }
 0x357   : > { %v3862_v29 = vpop.f32.mrf.mxu1 }
 0x358   : > { %v2676_v38 = vadd.f32 %v3861_v4, %v2675_v33  ;;  %v2831_v48 = vpack.c.bf16 %v2809_v20, %v2808_v51  ;;  %v2778_v5 = vadd.f32 %v5872_v11, %v2739_v23 }
 0x359   : > { %v3863_v27 = vpop.f32.mrf.mxu1 }
 0x35a   : > { %v2740_v49 = vadd.f32 %v2676_v38, %v5841_v31  ;;  %v3864_v60 = vadd.f32 %v3863_v27, %v3862_v29  ;;  %4185 = vmatmul.mubr.bf16.gmra.mxu0 %v2831_v48  ;;  %v2810_v36 = vmax.f32 %v2778_v5, 0.0 }
 0x35b   : > { %v3865_v43 = vpop.f32.mrf.mxu1 }
 0x35c   : > { %v2681_v56 = vadd.f32 %v4142_v39, %v3864_v60  ;;  %v2779_v14 = vadd.f32 %v5872_v11, %v2740_v49 }
 0x35d   : > { %v3866_v62 = vpop.f32.mrf.mxu1 }
 0x35e   : > { %v2741_v9 = vadd.f32 %v2681_v56, %v5835_v58  ;;  %v3867_v54 = vadd.f32 %v3866_v62, %v3865_v43  ;;  %v2811_v19 = vmax.f32 %v2779_v14, 0.0 }
 0x35f   : > { %v3868_v52 = vpop.f32.mrf.mxu1 }
 0x360   : > { %v2684_v26 = vadd.f32 %v4143_v41, %v3867_v54  ;;  %v2832_v30 = vpack.c.bf16 %v2811_v19, %v2810_v36  ;;  %v2780_v31 = vadd.f32 %v5872_v11, %v2741_v9 }
 0x361   : > { %v3869_v8 = vpop.f32.mrf.mxu1 }
 0x362   : > { %v2742_v24 = vadd.f32 %v2684_v26, %v5839_v15  ;;  %4188 = vmatprep.mubr.bf16.mxu0 %v2832_v30  ;;  %v2812_v47 = vmax.f32 %v2780_v31, 0.0  ;;  %v3870_v22 = vadd.f32 %v3869_v8, %v3868_v52 }
 0x363   : > { %v3871_v17 = vpop.f32.mrf.mxu1 }
 0x364   : > { %v2781_v12 = vadd.f32 %v5872_v11, %v2742_v24 }
 0x365   : > { %v3872_v35 = vpop.f32.mrf.mxu1 }
 0x366   : > { %v2813_v28 = vmax.f32 %v2781_v12, 0.0  ;;  %v3873_v1 = vadd.f32 %v3872_v35, %v3871_v17 }
 0x367   : > { %v3874_v39 = vpop.f32.mrf.mxu1 }
 0x368   : > { %v2833_v58 = vpack.c.bf16 %v2813_v28, %v2812_v47 }
 0x369   : > { %v3875_v32 = vpop.f32.mrf.mxu1 }
 0x36a   : > { %4189 = vmatmul.mubr.bf16.gmra.mxu0 %v2833_v58  ;;  %v3876_v37 = vadd.f32 %v3875_v32, %v3874_v39 }
 0x36b   : > { %v3877_v46 = vpop.f32.mrf.mxu1 }
 0x36d   : > { %v3878_v40 = vpop.f32.mrf.mxu1 }
 0x36e   : > { %v3879_v63 = vadd.f32 %v3878_v40, %v3877_v46 }
 0x36f   : > { %v3880_v3 = vpop.f32.mrf.mxu1 }
 0x371   : > { %v3881_v6 = vpop.f32.mrf.mxu1 }
 0x372   : > { %v3882_v38 = vadd.f32 %v3881_v6, %v3880_v3  ;;  %v4413_v3 = vld [vmem:[%s4965_s19 + $0x10] sm:$0xff] }
 0x373   : > { %v3883_v16 = vpop.f32.mrf.mxu1 }
 0x375   : > { %v3884_v42 = vpop.f32.mrf.mxu1 }
 0x376   : > { %v3885_v62 = vadd.f32 %v3884_v42, %v3883_v16 }
 0x377   : > { %v3886_v55 = vpop.f32.mrf.mxu1 }
 0x379   : > { %v3887_v57 = vpop.f32.mrf.mxu1 }
 0x37a   : > { %v3888_v23 = vadd.f32 %v3887_v57, %v3886_v55  ;;  %v4414_v57 = vld [vmem:[%s4965_s19] sm:$0xff] }
 0x37b   : > { %v3889_v15 = vpop.f32.mrf.mxu1 }
 0x37d   : > { %v3890_v10 = vpop.f32.mrf.mxu1 }
 0x37e   : > { %v3891_v9 = vadd.f32 %v3890_v10, %v3889_v15 }
 0x37f   : > { %v4146_v44 = vpop.f32.mrf.mxu1 }
 0x380   : > { %v2697_v34 = vadd.f32 %v4146_v44, %v3876_v37 }
 0x381   : > { %v2688_v59 = vpop.f32.mrf.mxu1 }
 0x382   : > { %v2745_v41 = vadd.f32 %v2697_v34, %v5844_v45  ;;  %v2689_v50 = vadd.f32 %v3870_v22, %v2688_v59  ;;  %v4415_v22 = vld [vmem:[%s4965_s19 + $0x18] sm:$0xff] }
 0x383   : > { %v4147_v2 = vpop.f32.mrf.mxu1 }
 0x384   : > { %v2743_v21 = vadd.f32 %v2689_v50, %v5846_v13  ;;  %v2700_v51 = vadd.f32 %v4147_v2, %v3879_v63  ;;  %v2784_v4 = vadd.f32 %v5872_v11, %v2745_v41  ;;  %v4416_v41 = vld [vmem:[%s4965_s19 + $0x8] sm:$0xff] }
 0x385   : > { %v2691_v20 = vpop.f32.mrf.mxu1 }
 0x386   : > { %v2746_v33 = vadd.f32 %v2700_v51, %v5849_v7  ;;  %v2692_v29 = vadd.f32 %v3873_v1, %v2691_v20  ;;  %v2782_v27 = vadd.f32 %v5872_v11, %v2743_v21  ;;  %v2816_v43 = vmax.f32 %v2784_v4, 0.0  ;;  %v4417_v20 = vld [vmem:[%s4965_s19 + $0x30] sm:$0xff] }
 0x387   : > { %v4150_v48 = vpop.f32.mrf.mxu1 }
 0x388   : > { %v2785_v49 = vadd.f32 %v5872_v11, %v2746_v33  ;;  %v2744_v45 = vadd.f32 %v2692_v29, %v5851_v0  ;;  %v2713_v60 = vadd.f32 %v4150_v48, %v3888_v23  ;;  %v2814_v36 = vmax.f32 %v2782_v27, 0.0 }
 0x389   : > { %v2704_v5 = vpop.f32.mrf.mxu1 }
 0x38a   : > { %v2817_v13 = vmax.f32 %v2785_v49, 0.0  ;;  %v2783_v56 = vadd.f32 %v5872_v11, %v2744_v45  ;;  %v2705_v14 = vadd.f32 %v3882_v38, %v2704_v5  ;;  %v2749_v7 = vadd.f32 %v2713_v60, %v5864_v18  ;;  %v4418_v38 = vld [vmem:[%s4965_s19 + $0x20] sm:$0xff]  ;;  %v4419_v60 = vld [vmem:[%s4965_s19 + $0x38] sm:$0xff] }
 0x38b   : > { %v4151_v54 = vpop.f32.mrf.mxu1 }
 0x38c   : > { %v2835_v19 = vpack.c.bf16 %v2817_v13, %v2816_v43  ;;  %v2815_v52 = vmax.f32 %v2783_v56, 0.0  ;;  %v2747_v26 = vadd.f32 %v2705_v14, %v5856_v53  ;;  %v2716_v30 = vadd.f32 %v4151_v54, %v3891_v9  ;;  %v4420_v56 = vld [vmem:[%s4965_s19 + $0x28] sm:$0xff] }
 0x38d   : > { %v2707_v8 = vpop.f32.mrf.mxu1  ;;  %v2788_v24 = vadd.f32 %v5872_v11, %v2749_v7 }
 0x38e   : > { %v2708_v0 = vadd.f32 %v3885_v62, %v2707_v8  ;;  %v2834_v31 = vpack.c.bf16 %v2815_v52, %v2814_v36  ;;  %v2750_v17 = vadd.f32 %v2716_v30, %v5866_v25  ;;  %v2786_v12 = vadd.f32 %v5872_v11, %v2747_v26  ;;  %v4421_v36 = vld [vmem:[%s4965_s19 + $0x50] sm:$0xff]  ;;  %v4422_v8 = vld [vmem:[%s4965_s19 + $0x40] sm:$0xff] }
 0x38f   : > { %v2820_v53 = vmax.f32 %v2788_v24, 0.0 }
 0x390   : > { %v2748_v35 = vadd.f32 %v2708_v0, %v5860_v61  ;;  %4192 = vmatprep.mubr.bf16.mxu0 %v2834_v31  ;;  %v2789_v18 = vadd.f32 %v5872_v11, %v2750_v17  ;;  %v2818_v39 = vmax.f32 %v2786_v12, 0.0  ;;  %v5940_v61 = vld [vmem:[%s6105_s8] ss:$0 sm:$0xff]  ;;  %v4423_v12 = vld [vmem:[%s4965_s19 + $0x58] sm:$0xff] }
 0x391   : > { %4193 = vmatmul.mubr.bf16.gmra.mxu0 %v2835_v19 }
 0x392   : > { %v2787_v47 = vadd.f32 %v5872_v11, %v2748_v35  ;;  %v2821_v28 = vmax.f32 %v2789_v18, 0.0 }
 0x394   : > { %v2819_v58 = vmax.f32 %v2787_v47, 0.0  ;;  %v2837_v32 = vpack.c.bf16 %v2821_v28, %v2820_v53  ;;  %v4424_v53 = vld [vmem:[%s4965_s19 + $0x48] sm:$0xff] }
 0x396   : > { %v2836_v46 = vpack.c.bf16 %v2819_v58, %v2818_v39 }
 0x398   : > { %4196 = vmatprep.mubr.bf16.mxu0 %v2836_v46 }
 0x399   : > { %4197 = vmatmul.mubr.bf16.gmra.mxu0 %v2837_v32 }
 0x3da   : > { %v4170_v25 = vpop.f32.mrf.mxu0 }
 0x3db   : > { %v2952_v40 = vadd.f32 %v4170_v25, %v5940_v61  ;;  %v4425_v25 = vld [vmem:[%s4965_s19 + $0x70] sm:$0xff] }
 0x3dc   : > { %v2943_v11 = vpop.f32.mrf.mxu0 }
 0x3dd   : > { %v3072_v6 = vadd.f32 %v4413_v3, %v2952_v40  ;;  %v2944_v16 = vadd.f32 %v5940_v61, %v2943_v11 }
 0x3de   : > { %v4171_v42 = vpop.f32.mrf.mxu0 }
 0x3df   : > { %v3104_v55 = vmax.f32 %v3072_v6, 0.0  ;;  %v3070_v15 = vadd.f32 %v4414_v57, %v2944_v16  ;;  %v2955_v10 = vadd.f32 %v4171_v42, %v5940_v61  ;;  %v4426_v16 = vld [vmem:[%s4965_s19 + $0x60] sm:$0xff] }
 0x3e0   : > { %v2946_v37 = vpop.f32.mrf.mxu0 }
 0x3e1   : > { %3136 = vst [vmem:[%s5949_s25 + $0x10] sm:$0xff] %v3104_v55  ;;  %v3102_v44 = vmax.f32 %v3070_v15, 0.0  ;;  %v3073_v34 = vadd.f32 %v4415_v22, %v2955_v10  ;;  %v2947_v59 = vadd.f32 %v5940_v61, %v2946_v37  ;;  %v4427_v10 = vld [vmem:[%s4965_s19 + $0x78] sm:$0xff] }
 0x3e3   : > { %3134 = vst [vmem:[%s5949_s25] sm:$0xff] %v3102_v44  ;;  %v3105_v63 = vmax.f32 %v3073_v34, 0.0  ;;  %v3071_v50 = vadd.f32 %v4416_v41, %v2947_v59  ;;  %v4428_v34 = vld [vmem:[%s4965_s19 + $0x68] sm:$0xff] }
 0x3e5   : > { %3137 = vst [vmem:[%s5949_s25 + $0x18] sm:$0xff] %v3105_v63  ;;  %v3103_v2 = vmax.f32 %v3071_v50, 0.0 }
 0x3e7   : > { %3135 = vst [vmem:[%s5949_s25 + $0x8] sm:$0xff] %v3103_v2 }
 0x3ea   : > { %v4174_v1 = vpop.f32.mrf.mxu0 }
 0x3eb   : > { %v2968_v21 = vadd.f32 %v4174_v1, %v5940_v61  ;;  %v4429_v1 = vld [vmem:[%s4965_s19 + $0x90] sm:$0xff] }
 0x3ec   : > { %v2959_v51 = vpop.f32.mrf.mxu0 }
 0x3ed   : > { %v3076_v23 = vadd.f32 %v4417_v20, %v2968_v21  ;;  %v2960_v4 = vadd.f32 %v5940_v61, %v2959_v51 }
 0x3ee   : > { %v4175_v33 = vpop.f32.mrf.mxu0 }
 0x3ef   : > { %v3108_v29 = vmax.f32 %v3076_v23, 0.0  ;;  %v3074_v48 = vadd.f32 %v4418_v38, %v2960_v4  ;;  %v2971_v27 = vadd.f32 %v4175_v33, %v5940_v61  ;;  %v4430_v4 = vld [vmem:[%s4965_s19 + $0x80] sm:$0xff] }
 0x3f0   : > { %v2962_v49 = vpop.f32.mrf.mxu0 }
 0x3f1   : > { %3140 = vst [vmem:[%s5949_s25 + $0x30] sm:$0xff] %v3108_v29  ;;  %v3106_v45 = vmax.f32 %v3074_v48, 0.0  ;;  %v3077_v5 = vadd.f32 %v4419_v60, %v2971_v27  ;;  %v2963_v43 = vadd.f32 %v5940_v61, %v2962_v49  ;;  %v4431_v27 = vld [vmem:[%s4965_s19 + $0x98] sm:$0xff] }
 0x3f3   : > { %3138 = vst [vmem:[%s5949_s25 + $0x20] sm:$0xff] %v3106_v45  ;;  %v3109_v13 = vmax.f32 %v3077_v5, 0.0  ;;  %v3075_v14 = vadd.f32 %v4420_v56, %v2963_v43  ;;  %v4432_v5 = vld [vmem:[%s4965_s19 + $0x88] sm:$0xff] }
 0x3f5   : > { %3141 = vst [vmem:[%s5949_s25 + $0x38] sm:$0xff] %v3109_v13  ;;  %v3107_v62 = vmax.f32 %v3075_v14, 0.0 }
 0x3f7   : > { %3139 = vst [vmem:[%s5949_s25 + $0x28] sm:$0xff] %v3107_v62 }
 0x3fa   : > { %v4178_v9 = vpop.f32.mrf.mxu0 }
 0x3fb   : > { %v2984_v7 = vadd.f32 %v4178_v9, %v5940_v61  ;;  %v4433_v9 = vld [vmem:[%s4965_s19 + $0xb0] sm:$0xff] }
 0x3fc   : > { %v2975_v54 = vpop.f32.mrf.mxu0 }
 0x3fd   : > { %v3080_v19 = vadd.f32 %v4421_v36, %v2984_v7  ;;  %v2976_v52 = vadd.f32 %v5940_v61, %v2975_v54 }
 0x3fe   : > { %v4179_v26 = vpop.f32.mrf.mxu0 }
 0x3ff   : > { %v3112_v30 = vmax.f32 %v3080_v19, 0.0  ;;  %v3078_v0 = vadd.f32 %v4422_v8, %v2976_v52  ;;  %v2987_v31 = vadd.f32 %v4179_v26, %v5940_v61  ;;  %v4434_v52 = vld [vmem:[%s4965_s19 + $0xa0] sm:$0xff] }
 0x400   : > { %v2978_v24 = vpop.f32.mrf.mxu0 }
 0x401   : > { %3144 = vst [vmem:[%s5949_s25 + $0x50] sm:$0xff] %v3112_v30  ;;  %v3110_v17 = vmax.f32 %v3078_v0, 0.0  ;;  %v3081_v35 = vadd.f32 %v4423_v12, %v2987_v31  ;;  %v2979_v18 = vadd.f32 %v5940_v61, %v2978_v24  ;;  %v4435_v31 = vld [vmem:[%s4965_s19 + $0xb8] sm:$0xff] }
 0x403   : > { %3142 = vst [vmem:[%s5949_s25 + $0x40] sm:$0xff] %v3110_v17  ;;  %v3113_v47 = vmax.f32 %v3081_v35, 0.0  ;;  %v3079_v28 = vadd.f32 %v4424_v53, %v2979_v18  ;;  %v4436_v35 = vld [vmem:[%s4965_s19 + $0xa8] sm:$0xff] }
 0x405   : > { %3145 = vst [vmem:[%s5949_s25 + $0x58] sm:$0xff] %v3113_v47  ;;  %v3111_v39 = vmax.f32 %v3079_v28, 0.0 }
 0x407   : > { %3143 = vst [vmem:[%s5949_s25 + $0x48] sm:$0xff] %v3111_v39 }
 0x40a   : > { %v4182_v58 = vpop.f32.mrf.mxu0 }
 0x40b   : > { %v3000_v32 = vadd.f32 %v4182_v58, %v5940_v61  ;;  %v4437_v58 = vld [vmem:[%s4965_s19 + $0xd0] sm:$0xff] }
 0x40c   : > { %v2991_v46 = vpop.f32.mrf.mxu0 }
 0x40d   : > { %v3084_v40 = vadd.f32 %v4425_v25, %v3000_v32  ;;  %v2992_v11 = vadd.f32 %v5940_v61, %v2991_v46 }
 0x40e   : > { %v4183_v3 = vpop.f32.mrf.mxu0 }
 0x40f   : > { %v3116_v6 = vmax.f32 %v3084_v40, 0.0  ;;  %v3082_v42 = vadd.f32 %v4426_v16, %v2992_v11  ;;  %v3003_v55 = vadd.f32 %v4183_v3, %v5940_v61  ;;  %v4438_v11 = vld [vmem:[%s4965_s19 + $0xc0] sm:$0xff] }
 0x410   : > { %v2994_v57 = vpop.f32.mrf.mxu0 }
 0x411   : > { %3148 = vst [vmem:[%s5949_s25 + $0x70] sm:$0xff] %v3116_v6  ;;  %v3114_v15 = vmax.f32 %v3082_v42, 0.0  ;;  %v3085_v37 = vadd.f32 %v4427_v10, %v3003_v55  ;;  %v2995_v44 = vadd.f32 %v5940_v61, %v2994_v57  ;;  %v4439_v55 = vld [vmem:[%s4965_s19 + $0xd8] sm:$0xff] }
 0x413   : > { %3146 = vst [vmem:[%s5949_s25 + $0x60] sm:$0xff] %v3114_v15  ;;  %v3117_v22 = vmax.f32 %v3085_v37, 0.0  ;;  %v3083_v59 = vadd.f32 %v4428_v34, %v2995_v44  ;;  %v4440_v44 = vld [vmem:[%s4965_s19 + $0xc8] sm:$0xff] }
 0x415   : > { %3149 = vst [vmem:[%s5949_s25 + $0x78] sm:$0xff] %v3117_v22  ;;  %v3115_v63 = vmax.f32 %v3083_v59, 0.0 }
 0x417   : > { %3147 = vst [vmem:[%s5949_s25 + $0x68] sm:$0xff] %v3115_v63 }
 0x41a   : > { %v4186_v41 = vpop.f32.mrf.mxu0 }
 0x41b   : > { %v3016_v50 = vadd.f32 %v4186_v41, %v5940_v61  ;;  %v4441_v41 = vld [vmem:[%s4965_s19 + $0xf0] sm:$0xff] }
 0x41c   : > { %v3007_v2 = vpop.f32.mrf.mxu0 }
 0x41d   : > { %v3088_v21 = vadd.f32 %v4429_v1, %v3016_v50  ;;  %v3008_v51 = vadd.f32 %v5940_v61, %v3007_v2 }
 0x41e   : > { %v4187_v20 = vpop.f32.mrf.mxu0 }
 0x41f   : > { %v3120_v23 = vmax.f32 %v3088_v21, 0.0  ;;  %v3086_v33 = vadd.f32 %v4430_v4, %v3008_v51  ;;  %v3019_v29 = vadd.f32 %v4187_v20, %v5940_v61  ;;  %v4442_v51 = vld [vmem:[%s4965_s19 + $0xe0] sm:$0xff] }
 0x420   : > { %v3010_v38 = vpop.f32.mrf.mxu0 }
 0x421   : > { %3152 = vst [vmem:[%s5949_s25 + $0x90] sm:$0xff] %v3120_v23  ;;  %v3118_v48 = vmax.f32 %v3086_v33, 0.0  ;;  %v3089_v49 = vadd.f32 %v4431_v27, %v3019_v29  ;;  %v3011_v45 = vadd.f32 %v5940_v61, %v3010_v38  ;;  %v4443_v29 = vld [vmem:[%s4965_s19 + $0xf8] sm:$0xff] }
 0x423   : > { %3150 = vst [vmem:[%s5949_s25 + $0x80] sm:$0xff] %v3118_v48  ;;  %v3121_v60 = vmax.f32 %v3089_v49, 0.0  ;;  %v3087_v43 = vadd.f32 %v4432_v5, %v3011_v45  ;;  %v4444_v49 = vld [vmem:[%s4965_s19 + $0xe8] sm:$0xff]  ;;  %s4711_s19 = smov [#allocation13]  }
 0x424   : > { %s4611_s30 = sshll.u32 %s4711_s19, 4  ;;  %s4612_s30 = int_to_ptr.vmem [resolvable:$false] %s4611_s30 }
 0x425   : > { %3153 = vst [vmem:[%s5949_s25 + $0x98] sm:$0xff] %v3121_v60  ;;  %v3119_v13 = vmax.f32 %v3087_v43, 0.0  ;;  %s4613_s17 = scalar_lea.vmem %s4612_s30, 8192  ;;  %p4614_p5 = scmp.lt.s32.totalorder %s6047_s9, %s4612_s30 }
 0x426   : > { %p4615_p4 = scmp.lt.s32.totalorder %s4613_s17, %s4607_s21 }
 0x427   : > { %3151 = vst [vmem:[%s5949_s25 + $0x88] sm:$0xff] %v3119_v13 }
 0x428   : > { %p4616_p1 = por %p4615_p4, %p4614_p5 }
 0x42a   : > { %v4190_v56 = vpop.f32.mrf.mxu0  ;;  %p4617_p10 = pnand %p4616_p1, %p4610_p3 }
 0x42b   : > { %v3032_v14 = vadd.f32 %v4190_v56, %v5940_v61 }
 0x42c   : > { %v3023_v62 = vpop.f32.mrf.mxu0 }
 0x42d   : > { %v3092_v7 = vadd.f32 %v4433_v9, %v3032_v14  ;;  %v3024_v54 = vadd.f32 %v5940_v61, %v3023_v62 }
 0x42e   : > { %v4191_v36 = vpop.f32.mrf.mxu0 }
 0x42f   : > { %v3124_v19 = vmax.f32 %v3092_v7, 0.0  ;;  %v3090_v26 = vadd.f32 %v4434_v52, %v3024_v54  ;;  %v3035_v30 = vadd.f32 %v4191_v36, %v5940_v61 }
 0x430   : > { %v3026_v8 = vpop.f32.mrf.mxu0 }
 0x431   : > { %3156 = vst [vmem:[%s5949_s25 + $0xb0] sm:$0xff] %v3124_v19  ;;  %v3122_v0 = vmax.f32 %v3090_v26, 0.0  ;;  %v3093_v24 = vadd.f32 %v4435_v31, %v3035_v30  ;;  %v3027_v17 = vadd.f32 %v5940_v61, %v3026_v8 }
 0x433   : > { %3154 = vst [vmem:[%s5949_s25 + $0xa0] sm:$0xff] %v3122_v0  ;;  %v3125_v12 = vmax.f32 %v3093_v24, 0.0  ;;  %v3091_v18 = vadd.f32 %v4436_v35, %v3027_v17 }
 0x435   : > { %3157 = vst [vmem:[%s5949_s25 + $0xb8] sm:$0xff] %v3125_v12  ;;  %v3123_v47 = vmax.f32 %v3091_v18, 0.0 }
 0x437   : > { %3155 = vst [vmem:[%s5949_s25 + $0xa8] sm:$0xff] %v3123_v47 }
 0x451   : > { %v4194_v53 = vpop.f32.mrf.mxu0 }
 0x452   : > { %v3048_v28 = vadd.f32 %v4194_v53, %v5940_v61 }
 0x453   : > { %v3039_v39 = vpop.f32.mrf.mxu0 }
 0x454   : > { %v3096_v32 = vadd.f32 %v4437_v58, %v3048_v28  ;;  %v3040_v46 = vadd.f32 %v5940_v61, %v3039_v39 }
 0x455   : > { %v4195_v25 = vpop.f32.mrf.mxu0 }
 0x456   : > { %v3128_v40 = vmax.f32 %v3096_v32, 0.0  ;;  %v3094_v3 = vadd.f32 %v4438_v11, %v3040_v46  ;;  %v3051_v6 = vadd.f32 %v4195_v25, %v5940_v61 }
 0x457   : > { %v3042_v16 = vpop.f32.mrf.mxu0 }
 0x458   : > { %3160 = vst [vmem:[%s5949_s25 + $0xd0] sm:$0xff] %v3128_v40  ;;  %v3126_v42 = vmax.f32 %v3094_v3, 0.0  ;;  %v3097_v57 = vadd.f32 %v4439_v55, %v3051_v6  ;;  %v3043_v15 = vadd.f32 %v5940_v61, %v3042_v16 }
 0x459   : > { %v4198_v10 = vpop.f32.mrf.mxu0 }
 0x45a   : > { %3158 = vst [vmem:[%s5949_s25 + $0xc0] sm:$0xff] %v3126_v42  ;;  %v3129_v37 = vmax.f32 %v3097_v57, 0.0  ;;  %v3095_v22 = vadd.f32 %v4440_v44, %v3043_v15  ;;  %v3064_v34 = vadd.f32 %v4198_v10, %v5940_v61 }
 0x45b   : > { %v3055_v59 = vpop.f32.mrf.mxu0 }
 0x45c   : > { %3161 = vst [vmem:[%s5949_s25 + $0xd8] sm:$0xff] %v3129_v37  ;;  %v3127_v63 = vmax.f32 %v3095_v22, 0.0  ;;  %v3100_v50 = vadd.f32 %v4441_v41, %v3064_v34  ;;  %v3056_v2 = vadd.f32 %v5940_v61, %v3055_v59 }
 0x45d   : > { %v4199_v1 = vpop.f32.mrf.mxu0 }
 0x45e   : > { %3159 = vst [vmem:[%s5949_s25 + $0xc8] sm:$0xff] %v3127_v63  ;;  %v3132_v21 = vmax.f32 %v3100_v50, 0.0  ;;  %v3098_v20 = vadd.f32 %v4442_v51, %v3056_v2  ;;  %v3067_v23 = vadd.f32 %v4199_v1, %v5940_v61 }
 0x45f   : > { %v3058_v4 = vpop.f32.mrf.mxu0 }
 0x460   : > { %3164 = vst [vmem:[%s5949_s25 + $0xf0] sm:$0xff] %v3132_v21  ;;  %v3130_v33 = vmax.f32 %v3098_v20, 0.0  ;;  %v3101_v38 = vadd.f32 %v4443_v29, %v3067_v23  ;;  %v3059_v48 = vadd.f32 %v5940_v61, %v3058_v4 }
 0x462   : > { %3162 = vst [vmem:[%s5949_s25 + $0xe0] sm:$0xff] %v3130_v33  ;;  %v3133_v27 = vmax.f32 %v3101_v38, 0.0  ;;  %v3099_v45 = vadd.f32 %v4444_v49, %v3059_v48 }
 0x464   : > { %3165 = vst [vmem:[%s5949_s25 + $0xf8] sm:$0xff] %v3133_v27  ;;  %v3131_v60 = vmax.f32 %v3099_v45, 0.0 }
 0x466   : > { %3163 = vst [vmem:[%s5949_s25 + $0xe8] sm:$0xff] %v3131_v60 }
 0x467   : > { %4620 = shalt.err (!%p4617_p10)
}
 0x468   : > { %s4621_s27 = scalar_lea.hbm %s6045_s29, 4096  ;;  %s4625_s24 = scalar_lea.hbm %s6203_s26, 8192 }
 0x469   : > { %p4622_p2 = scmp.ne.s32.totalorder %s6045_s29, %s4621_s27  ;;  %p4626_p0 = scmp.lt.s32.totalorder %s6045_s29, %s6203_s26 }
 0x46a   : > { %p4627_p11 = scmp.lt.s32.totalorder %s4625_s24, %s4621_s27 }
 0x46b   : > { %p4623_p7 = pnand %p4622_p2, %p4815_p8 }
 0x46c   : > { %p4628_p9 = por %p4627_p11, %p4626_p0 }
 0x46d   : > { %p4624_p12 = pneg %p4623_p7 }
 0x46f   : > { %p4629_p6 = pnand %p4628_p9, %p4624_p12 }
 0x471   : > { %4632 = shalt.err (!%p4629_p6)
}
 0x472   : > { %s4712_s12 = smov 128   ;;  %s4713_s25 = smov 8  }
 0x473   : > { %4234 = dma.vmem_to_hbm [thread:$0]  (%p4815_p8), %s6047_s9, 4096, %s6045_s29, %s3167_s11, %s4712_s12, %s4712_s12, %s4713_s25  }
 0x474 PF: > { %s6204_s16 = sld [smem:[#allocation19_spill]]  ;;  %p6207_p3 = scmp.ge.s32.totalorder %s4699_s14, 2 }
 0x475   : > { %s6205_s5 = sld [smem:[#allocation24_spill]] }
 0x47a   : > { %s3198_s20 = sand.u32 1, %s6204_s16  }
 0x47b   : > { %p6206_p13 = scmp.ne.s32.totalorder %s6205_s5, 0  ;;  %s3199_s3 = scalar_lea.sflag [#allocation4], %s3198_s20 }
 0x47d   : > { %p4257_p5 = pnand %p6207_p3, %p6206_p13 }
 0x47f   : > { %p4258_p4 = pneg %p4257_p5 }
 0x481   : > { %4674 = dma.done.wait (%p4258_p4), %s3199_s3, 4096  }
 0x482   : > { %4676 = vsyncadd (%p4258_p4), %s3199_s3, 4294963200  ;;  %s30_s14 = sadd.s32 1, %s4699_s14   ;;  %s6208_s13 = sld [smem:[#allocation20_spill]] }
 0x483   : > { %p27_p1 = scmp.ge.s32.totalorder %s30_s14, 4   ;;  %s6209_s11 = sld [smem:[#allocation26_spill]] }
 0x484   : > { %s6210_s12 = sld [smem:[#allocation22_spill]]  ;;  %s6212_s30 = smov %s4683_s10 }
 0x485   : > { %s6211_s22 = sld [smem:[#allocation25_spill]] }
 0x487   :  { %29 = sbr.rel (!%p27_p1) target bundleno = 15 (0xf), region = 139 }
 0x488   : > { %s6213_s10 = smov %s6208_s13 }
 0x48b   : > { %s6214_s13 = smov %s6211_s22 }
 0x48c   :  { %3204 = vsyncpa [#allocation3], 1 }
 0x48d   :  { %3206 = vsyncpa [#allocation3 + $0x1], 1 }
 0x48e   :  { %3207 = vsyncpa [#allocation6], 1 }
 0x48f   :  { %3209 = vsyncpa [#allocation6 + $0x1], 1 }
 0x490   :  { %3210 = vsyncpa [#allocation9], 1 }
 0x491   :  { %3211 = vsyncpa [#allocation12], 1 }
 0x492   :  { %3212 = vsyncpa [#allocation4], 1 }
 0x493   :  { %3214 = vsyncpa [#allocation4 + $0x1], 1 }

</bundles_post_ra>
